<compile_context>
chip_gen: v6e
topology: v6e:2x2x1
jax: 0.10.0
libtpu: 0.0.40
codegen_flags: <defaults>
</compile_context>

<pallas_src>
import functools
import math

import jax
import jax.numpy as jnp
from jax import lax
from jax.experimental import pallas as pl
from jax.experimental.pallas import tpu as pltpu


def _round_up(x, m):
    return ((x + m - 1) // m) * m


def _tpu_info():
    """Best-effort (num_tensorcores_per_chip, vmem_capacity_bytes)."""
    n_cores, vmem_cap = 1, 64 << 20          # conservative fallbacks
    try:
        info = pltpu.get_tpu_info()
        for attr in ("num_cores", "tensorcore_count", "num_tensorcores",
                     "cores_per_chip"):
            v = getattr(info, attr, None)
            if v:
                n_cores = int(v)
                break
        for attr in ("vmem_capacity_bytes", "vmem_bytes", "vmem_size_bytes"):
            v = getattr(info, attr, None)
            if v:
                vmem_cap = int(v)
                break
    except Exception:
        pass
    return n_cores, vmem_cap


def _prep_gate_weights(W, U, hid_bias, NH, NHp, mxu_dtype):
    """Reorder gate columns [i|f|g|o] -> [i|f|o|g]; zero-pad each gate block
    (and U's rows) from NH to NHp.  Zero padding keeps padded lanes of h and c
    identically zero, so results are unchanged."""
    def cols(M2):                                   # (rows, 4*NH)
        i, f, g, o = jnp.split(M2, 4, axis=1)
        blocks = (i, f, o, g)
        if NHp != NH:
            blocks = tuple(jnp.pad(b, ((0, 0), (0, NHp - NH))) for b in blocks)
        return jnp.concatenate(blocks, axis=1)

    W_p = cols(W)
    U_p = cols(U)
    if NHp != NH:
        U_p = jnp.pad(U_p, ((0, NHp - NH), (0, 0)))
    b_p = cols(hid_bias.reshape(1, 4 * NH))
    return W_p.astype(mxu_dtype), U_p.astype(mxu_dtype), b_p.astype(jnp.float32)


def lstm_kernel(x_ref, w_ref, u_ref, b_ref, h_out_ref, xw_ref, h_ref, c_ref,
                *, unroll):
    """One (batch block, time chunk) grid step.

    Phase 1: hoisted input projection for the whole chunk (one big MXU matmul,
             no serial dependence), staged in VMEM scratch (MXU dtype).
    Phase 2: sequential recurrence over the chunk; h/c carried as loop values
             (vregs) inside the chunk and in tiny VMEM scratch across chunks.
             Gate columns are pre-ordered [i | f | o | g]: one sigmoid over
             3*NH lanes + one tanh over NH lanes per step.
    """
    T, BB, E = x_ref.shape
    NH = h_out_ref.shape[-1]          # padded hidden size (multiple of 128)
    mxu_dtype = u_ref.dtype
    t_chunk = pl.program_id(1)

    # ---- Phase 1: chunk input projection (off the serial path) --------------
    x_all = x_ref[...].reshape(T * BB, E)
    xw = jnp.dot(x_all, w_ref[...], preferred_element_type=jnp.float32)
    xw = xw + b_ref[...]                              # hid_bias folded in once
    xw_ref[...] = xw.astype(xw_ref.dtype).reshape(T, BB, 4 * NH)

    # ---- carried state: init at the first chunk of every batch block --------
    @pl.when(t_chunk == 0)
    def _():
        h_ref[...] = jnp.zeros_like(h_ref)
        c_ref[...] = jnp.zeros_like(c_ref)

    # ---- Phase 2: recurrence (serial critical path) --------------------------
    def step(t, carry):
        h_prev, c_prev = carry                        # h: mxu dtype, c: f32
        gates = xw_ref[t].astype(jnp.float32) + jnp.dot(
            h_prev, u_ref[...], preferred_element_type=jnp.float32)
        sig = jax.nn.sigmoid(gates[:, :3 * NH])       # [i | f | o], vreg-aligned
        i_t = sig[:, :NH]
        f_t = sig[:, NH:2 * NH]
        o_t = sig[:, 2 * NH:3 * NH]
        g_t = jnp.tanh(gates[:, 3 * NH:])             # g
        c_new = f_t * c_prev + i_t * g_t
        h_new = (o_t * jnp.tanh(c_new)).astype(mxu_dtype)
        return h_new, c_new

    h_fin, c_fin = lax.fori_loop(0, T, step, (h_ref[...], c_ref[...]),
                                 unroll=unroll)
    h_ref[...] = h_fin
    c_ref[...] = c_fin

    @pl.when(t_chunk == pl.num_programs(1) - 1)
    def _():
        h_out_ref[...] = h_fin.astype(h_out_ref.dtype)


def lstm_forward(token_ids, params, *, matmul_dtype=jnp.bfloat16,
                 num_batch_blocks=None, time_chunk=None, pad_hidden=True):
    """token_ids: (B, S) int32.  Returns (B, num_out) float32."""
    emb, W, U = params["embedding"], params["W"], params["U"]
    hid_bias, V, out_bias = params["hid_bias"], params["V"], params["out_bias"]

    B, S = token_ids.shape
    E = emb.shape[1]
    NH = U.shape[0]
    NHp = _round_up(NH, 128) if pad_hidden else NH
    mxu_bytes = jnp.dtype(matmul_dtype).itemsize
    min_rows = 16 if mxu_bytes == 2 else 8            # sublane tile of x block

    # Embedding lookup (gather) stays in XLA; time-major for the kernel.
    x_emb = jnp.take(emb, token_ids, axis=0)                       # (B, S, E)
    x_tm = jnp.transpose(x_emb, (1, 0, 2)).astype(matmul_dtype)    # (S, B, E)

    w_p, u_p, b_p = _prep_gate_weights(W, U, hid_bias, NH, NHp, matmul_dtype)

    # ---- batch blocking: split only across real TensorCores (v7x) ----------
    n_cores, vmem_cap = _tpu_info()
    if num_batch_blocks is None:
        num_batch_blocks = n_cores if (n_cores > 1
                                       and B % (n_cores * min_rows) == 0) else 1
    assert B % num_batch_blocks == 0, (B, num_batch_blocks)
    bb = B // num_batch_blocks
    assert num_batch_blocks == 1 or bb % min_rows == 0, (bb, min_rows)

    # ---- time chunking: bound XW scratch, stream x through VMEM ------------
    if time_chunk is None:
        per_step = bb * (2 * E + 4 * NHp) * mxu_bytes       # x (2 bufs) + XW
        target = max(1, (8 << 20) // max(per_step, 1))
        time_chunk = 1
        for d in range(min(S, target), 0, -1):
            if S % d == 0:
                time_chunk = d
                break
    assert S % time_chunk == 0, (S, time_chunk)
    num_chunks = S // time_chunk
    unroll = int(time_chunk) if time_chunk <= 32 else 8

    # ---- explicit VMEM budget (working set + headroom, capped per core) ----
    vmem_need = (2 * time_chunk * bb * E * mxu_bytes          # x chunk (2 bufs)
                 + time_chunk * bb * 4 * NHp * mxu_bytes      # XW scratch
                 + E * 4 * NHp * mxu_bytes                    # W
                 + NHp * 4 * NHp * mxu_bytes                  # U
                 + 4 * NHp * 4                                # bias (f32)
                 + bb * NHp * (mxu_bytes + 4)                 # h / c carry
                 + 2 * bb * NHp * 4)                          # out block (2 bufs)
    vmem_limit = int(min(max(2 * vmem_need, 32 << 20), (vmem_cap * 3) // 4))

    cost = pl.CostEstimate(
        flops=2 * S * B * E * 4 * NHp + 2 * S * B * NHp * 4 * NHp,
        transcendentals=S * B * 5 * NHp,
        bytes_accessed=(S * B * E + E * 4 * NHp + NHp * 4 * NHp) * mxu_bytes
                       + 4 * NHp * 4 + B * NHp * 4,
    )

    kernel = functools.partial(lstm_kernel, unroll=unroll)
    h_final = pl.pallas_call(
        kernel,
        out_shape=jax.ShapeDtypeStruct((B, NHp), jnp.float32),
        grid_spec=pltpu.PrefetchScalarGridSpec(
            num_scalar_prefetch=0,
            grid=(num_batch_blocks, num_chunks),
            in_specs=[
                pl.BlockSpec((time_chunk, bb, E), lambda i, t: (t, i, 0)),  # x
                pl.BlockSpec((E, 4 * NHp), lambda i, t: (0, 0)),            # W
                pl.BlockSpec((NHp, 4 * NHp), lambda i, t: (0, 0)),          # U
                pl.BlockSpec((1, 4 * NHp), lambda i, t: (0, 0)),            # bias
            ],
            out_specs=pl.BlockSpec((bb, NHp), lambda i, t: (i, 0)),   # final h
            scratch_shapes=[
                pltpu.VMEM((time_chunk, bb, 4 * NHp), matmul_dtype),  # XW chunk
                pltpu.VMEM((bb, NHp), matmul_dtype),                  # h carry
                pltpu.VMEM((bb, NHp), jnp.float32),                   # c carry
            ],
        ),
        compiler_params=pltpu.CompilerParams(
            # On v7x, CORE_PARALLEL on the batch axis would guarantee the
            # megacore split; "parallel" is the portable choice here.
            dimension_semantics=("parallel", "arbitrary"),
            vmem_limit_bytes=vmem_limit,
        ),
        cost_estimate=cost,
    )(x_tm, w_p, u_p, b_p)

    # Final tiny (B, num_out) projection in plain XLA (lane-sparse output);
    # drop the zero-padded hidden lanes first.
    return h_final[:, :NH] @ V + out_bias


def lstm_reference(token_ids, params):
    """Pure-JAX f32 reference mirroring the PyTorch forward exactly."""
    emb, W, U, hid_bias, V, out_bias = (params["embedding"], params["W"],
                                        params["U"], params["hid_bias"],
                                        params["V"], params["out_bias"])
    x = jnp.take(emb, token_ids, axis=0)  # (B, S, E)
    B, S, _ = x.shape
    NH = U.shape[0]
    h_t = jnp.zeros((B, NH), jnp.float32)
    c_t = jnp.zeros((B, NH), jnp.float32)
    for t in range(S):
        x_t = x[:, t, :]
        gates = x_t @ W + h_t @ U + hid_bias
        i_t = jax.nn.sigmoid(gates[:, :NH])
        f_t = jax.nn.sigmoid(gates[:, NH:2 * NH])
        g_t = jnp.tanh(gates[:, 2 * NH:3 * NH])
        o_t = jax.nn.sigmoid(gates[:, 3 * NH:])
        c_t = f_t * c_t + i_t * g_t
        h_t = o_t * jnp.tanh(c_t)
    return h_t @ V + out_bias


def init_params(key, vocab_size, embed_dim, num_hid, num_out):
    stdv = 1.0 / math.sqrt(num_hid)
    ks = jax.random.split(key, 6)
    uni = lambda k, shape: jax.random.uniform(k, shape, jnp.float32, -stdv, stdv)
    return {
        "embedding": uni(ks[0], (vocab_size, embed_dim)),
        "W": uni(ks[1], (embed_dim, num_hid * 4)),
        "U": uni(ks[2], (num_hid, num_hid * 4)),
        "hid_bias": uni(ks[3], (num_hid * 4,)),
        "V": uni(ks[4], (num_hid, num_out)),
        "out_bias": uni(ks[5], (num_out,)),
    }


if __name__ == "__main__":
    vocab_size, embed_dim, num_hid, num_out = 64, 32, 32, 16
    batch, seq = 8, 8

    key = jax.random.PRNGKey(0)
    pkey, xkey = jax.random.split(key)
    params = init_params(pkey, vocab_size, embed_dim, num_hid, num_out)
    token_ids = jax.random.randint(xkey, (batch, seq), 0, vocab_size,
                                   dtype=jnp.int32)

    ref = jax.block_until_ready(lstm_reference(token_ids, params))

    # Exact-semantics check: f32 MXU inputs / state / scratch.
    fwd_f32 = jax.jit(functools.partial(lstm_forward,
                                        matmul_dtype=jnp.float32))
    out_f32 = jax.block_until_ready(fwd_f32(token_ids, params))
    assert out_f32.shape == (batch, num_out)
    err32 = float(jnp.max(jnp.abs(out_f32 - ref)))
    assert err32 < 5e-3, f"f32 max abs err {err32}"

    # Production config: bf16 MXU inputs / h carry / XW scratch, f32 accum & c.
    fwd_bf16 = jax.jit(functools.partial(lstm_forward,
                                         matmul_dtype=jnp.bfloat16))
    out_bf16 = jax.block_until_ready(fwd_bf16(token_ids, params))
    assert out_bf16.shape == (batch, num_out)
    err16 = float(jnp.max(jnp.abs(out_bf16 - ref)))
    assert err16 < 6e-2, f"bf16 max abs err {err16}"

    print("KERNEL_OK")
</pallas_src>

<mosaic_0001>
module attributes {stable_mosaic.version = 11 : i64} {
  func.func @lstm_kernel(%arg0: i32, %arg1: i32, %arg2: memref<8x8x32xf32, #tpu.memory_space<vmem>>, %arg3: memref<32x512xf32, #tpu.memory_space<vmem>>, %arg4: memref<128x512xf32, #tpu.memory_space<vmem>>, %arg5: memref<1x512xf32, #tpu.memory_space<vmem>>, %arg6: memref<8x128xf32, #tpu.memory_space<vmem>>, %arg7: memref<8x8x512xf32, #tpu.memory_space<vmem>>, %arg8: memref<8x128xf32, #tpu.memory_space<vmem>>, %arg9: memref<8x128xf32, #tpu.memory_space<vmem>>) attributes {dimension_semantics = [#tpu.dimension_semantics<parallel>, #tpu.dimension_semantics<arbitrary>], iteration_bounds = array<i64: 1, 1>, scalar_prefetch = 0 : i64, scratch_operands = 3 : i64, tpu.core_type = #tpu.core_type<tc>, window_params = [{transform_indices = @transform_0, window_bounds = array<i64: 8, 8, 32>}, {pipeline_mode = #tpu.pipeline_mode<synchronous>, transform_indices = @transform_1, window_bounds = array<i64: 32, 512>}, {pipeline_mode = #tpu.pipeline_mode<synchronous>, transform_indices = @transform_2, window_bounds = array<i64: 128, 512>}, {pipeline_mode = #tpu.pipeline_mode<synchronous>, transform_indices = @transform_3, window_bounds = array<i64: 1, 512>}, {transform_indices = @transform_4, window_bounds = array<i64: 8, 128>}]} {
    %c0 = arith.constant 0 : index
    %c0_0 = arith.constant 0 : index
    %c0_1 = arith.constant 0 : index
    %0 = vector.load %arg2[%c0, %c0_0, %c0_1] : memref<8x8x32xf32, #tpu.memory_space<vmem>>, vector<8x8x32xf32>
    %1 = vector.shape_cast %0 : vector<8x8x32xf32> to vector<64x32xf32>
    %c0_2 = arith.constant 0 : index
    %c0_3 = arith.constant 0 : index
    %2 = vector.load %arg3[%c0_2, %c0_3] : memref<32x512xf32, #tpu.memory_space<vmem>>, vector<32x512xf32>
    %cst = arith.constant dense<0.000000e+00> : vector<64x512xf32>
    %3 = tpu.matmul %1, %2, %cst {dimension_numbers = #tpu.dot_dimension_numbers<[1], [0], [0], [1], [0, 0, 1, 1], [], []>} : vector<64x32xf32>, vector<32x512xf32>, vector<64x512xf32> -> vector<64x512xf32>
    %c0_4 = arith.constant 0 : index
    %c0_5 = arith.constant 0 : index
    %4 = vector.load %arg5[%c0_4, %c0_5] : memref<1x512xf32, #tpu.memory_space<vmem>>, vector<1x512xf32>
    %5 = vector.broadcast %4 : vector<1x512xf32> to vector<64x512xf32>
    %6 = arith.addf %3, %5 : vector<64x512xf32>
    %7 = vector.shape_cast %6 : vector<64x512xf32> to vector<8x8x512xf32>
    %c0_6 = arith.constant 0 : index
    %c0_7 = arith.constant 0 : index
    %c0_8 = arith.constant 0 : index
    %8 = vector.load %arg7[%c0_6, %c0_7, %c0_8] : memref<8x8x512xf32, #tpu.memory_space<vmem>>, vector<8x8x512xf32>
    tpu.vector_store %arg7[%c0_6, %c0_7, %c0_8], %7 {strides = array<i32>} : memref<8x8x512xf32, #tpu.memory_space<vmem>>, vector<8x8x512xf32>,
    %c0_i32 = arith.constant 0 : i32
    %9 = arith.cmpi eq, %arg1, %c0_i32 : i32
    %10 = arith.extui %9 : i1 to i32
    %c0_i32_9 = arith.constant 0 : i32
    %11 = arith.cmpi ne, %10, %c0_i32_9 : i32
    scf.if %11 {
      %cst_69 = arith.constant 0.000000e+00 : f32
      %195 = vector.broadcast %cst_69 : f32 to vector<8x128xf32>
      %c0_70 = arith.constant 0 : index
      %c0_71 = arith.constant 0 : index
      %196 = vector.load %arg8[%c0_70, %c0_71] : memref<8x128xf32, #tpu.memory_space<vmem>>, vector<8x128xf32>
      tpu.vector_store %arg8[%c0_70, %c0_71], %195 {strides = array<i32>} : memref<8x128xf32, #tpu.memory_space<vmem>>, vector<8x128xf32>,
      %cst_72 = arith.constant 0.000000e+00 : f32
      %197 = vector.broadcast %cst_72 : f32 to vector<8x128xf32>
      %c0_73 = arith.constant 0 : index
      %c0_74 = arith.constant 0 : index
      %198 = vector.load %arg9[%c0_73, %c0_74] : memref<8x128xf32, #tpu.memory_space<vmem>>, vector<8x128xf32>
      tpu.vector_store %arg9[%c0_73, %c0_74], %197 {strides = array<i32>} : memref<8x128xf32, #tpu.memory_space<vmem>>, vector<8x128xf32>,
    } else {
    }
    %c0_10 = arith.constant 0 : index
    %c0_11 = arith.constant 0 : index
    %12 = vector.load %arg8[%c0_10, %c0_11] : memref<8x128xf32, #tpu.memory_space<vmem>>, vector<8x128xf32>
    %c0_12 = arith.constant 0 : index
    %c0_13 = arith.constant 0 : index
    %13 = vector.load %arg9[%c0_12, %c0_13] : memref<8x128xf32, #tpu.memory_space<vmem>>, vector<8x128xf32>
    %c0_i32_14 = arith.constant 0 : i32
    %14 = arith.index_cast %c0_i32_14 : i32 to index
    %c0_15 = arith.constant 0 : index
    %c0_16 = arith.constant 0 : index
    %15 = vector.load %arg7[%14, %c0_15, %c0_16] : memref<8x8x512xf32, #tpu.memory_space<vmem>>, vector<1x8x512xf32>
    %16 = vector.shape_cast %15 : vector<1x8x512xf32> to vector<8x512xf32>
    %c0_17 = arith.constant 0 : index
    %c0_18 = arith.constant 0 : index
    %17 = vector.load %arg4[%c0_17, %c0_18] : memref<128x512xf32, #tpu.memory_space<vmem>>, vector<128x512xf32>
    %cst_19 = arith.constant dense<0.000000e+00> : vector<8x512xf32>
    %18 = tpu.matmul %12, %17, %cst_19 {dimension_numbers = #tpu.dot_dimension_numbers<[1], [0], [0], [1], [0, 0, 1, 1], [], []>} : vector<8x128xf32>, vector<128x512xf32>, vector<8x512xf32> -> vector<8x512xf32>
    %19 = arith.addf %16, %18 : vector<8x512xf32>
    %20 = vector.extract_strided_slice %19 {offsets = [0, 0], sizes = [8, 384], strides = [1, 1]} : vector<8x512xf32> to vector<8x384xf32>
    %21 = arith.negf %20 : vector<8x384xf32>
    %22 = math.exp %21 : vector<8x384xf32>
    %cst_20 = arith.constant 1.000000e+00 : f32
    %23 = vector.broadcast %cst_20 : f32 to vector<8x384xf32>
    %24 = arith.addf %23, %22 : vector<8x384xf32>
    %25 = arith.divf %23, %24 : vector<8x384xf32>
    %26 = vector.extract_strided_slice %25 {offsets = [0, 0], sizes = [8, 128], strides = [1, 1]} : vector<8x384xf32> to vector<8x128xf32>
    %27 = vector.extract_strided_slice %25 {offsets = [0, 128], sizes = [8, 128], strides = [1, 1]} : vector<8x384xf32> to vector<8x128xf32>
    %28 = vector.extract_strided_slice %25 {offsets = [0, 256], sizes = [8, 128], strides = [1, 1]} : vector<8x384xf32> to vector<8x128xf32>
    %29 = vector.extract_strided_slice %19 {offsets = [0, 384], sizes = [8, 128], strides = [1, 1]} : vector<8x512xf32> to vector<8x128xf32>
    %30 = math.tanh %29 : vector<8x128xf32>
    %31 = arith.mulf %27, %13 : vector<8x128xf32>
    %32 = arith.mulf %26, %30 : vector<8x128xf32>
    %33 = arith.addf %31, %32 : vector<8x128xf32>
    %34 = math.tanh %33 : vector<8x128xf32>
    %35 = arith.mulf %28, %34 : vector<8x128xf32>
    %c1_i32 = arith.constant 1 : i32
    %36 = arith.index_cast %c1_i32 : i32 to index
    %c0_21 = arith.constant 0 : index
    %c0_22 = arith.constant 0 : index
    %37 = vector.load %arg7[%36, %c0_21, %c0_22] : memref<8x8x512xf32, #tpu.memory_space<vmem>>, vector<1x8x512xf32>
    %38 = vector.shape_cast %37 : vector<1x8x512xf32> to vector<8x512xf32>
    %c0_23 = arith.constant 0 : index
    %c0_24 = arith.constant 0 : index
    %39 = vector.load %arg4[%c0_23, %c0_24] : memref<128x512xf32, #tpu.memory_space<vmem>>, vector<128x512xf32>
    %cst_25 = arith.constant dense<0.000000e+00> : vector<8x512xf32>
    %40 = tpu.matmul %35, %39, %cst_25 {dimension_numbers = #tpu.dot_dimension_numbers<[1], [0], [0], [1], [0, 0, 1, 1], [], []>} : vector<8x128xf32>, vector<128x512xf32>, vector<8x512xf32> -> vector<8x512xf32>
    %41 = arith.addf %38, %40 : vector<8x512xf32>
    %42 = vector.extract_strided_slice %41 {offsets = [0, 0], sizes = [8, 384], strides = [1, 1]} : vector<8x512xf32> to vector<8x384xf32>
    %43 = arith.negf %42 : vector<8x384xf32>
    %44 = math.exp %43 : vector<8x384xf32>
    %cst_26 = arith.constant 1.000000e+00 : f32
    %45 = vector.broadcast %cst_26 : f32 to vector<8x384xf32>
    %46 = arith.addf %45, %44 : vector<8x384xf32>
    %47 = arith.divf %45, %46 : vector<8x384xf32>
    %48 = vector.extract_strided_slice %47 {offsets = [0, 0], sizes = [8, 128], strides = [1, 1]} : vector<8x384xf32> to vector<8x128xf32>
    %49 = vector.extract_strided_slice %47 {offsets = [0, 128], sizes = [8, 128], strides = [1, 1]} : vector<8x384xf32> to vector<8x128xf32>
    %50 = vector.extract_strided_slice %47 {offsets = [0, 256], sizes = [8, 128], strides = [1, 1]} : vector<8x384xf32> to vector<8x128xf32>
    %51 = vector.extract_strided_slice %41 {offsets = [0, 384], sizes = [8, 128], strides = [1, 1]} : vector<8x512xf32> to vector<8x128xf32>
    %52 = math.tanh %51 : vector<8x128xf32>
    %53 = arith.mulf %49, %33 : vector<8x128xf32>
    %54 = arith.mulf %48, %52 : vector<8x128xf32>
    %55 = arith.addf %53, %54 : vector<8x128xf32>
    %56 = math.tanh %55 : vector<8x128xf32>
    %57 = arith.mulf %50, %56 : vector<8x128xf32>
    %c2_i32 = arith.constant 2 : i32
    %58 = arith.index_cast %c2_i32 : i32 to index
    %c0_27 = arith.constant 0 : index
    %c0_28 = arith.constant 0 : index
    %59 = vector.load %arg7[%58, %c0_27, %c0_28] : memref<8x8x512xf32, #tpu.memory_space<vmem>>, vector<1x8x512xf32>
    %60 = vector.shape_cast %59 : vector<1x8x512xf32> to vector<8x512xf32>
    %c0_29 = arith.constant 0 : index
    %c0_30 = arith.constant 0 : index
    %61 = vector.load %arg4[%c0_29, %c0_30] : memref<128x512xf32, #tpu.memory_space<vmem>>, vector<128x512xf32>
    %cst_31 = arith.constant dense<0.000000e+00> : vector<8x512xf32>
    %62 = tpu.matmul %57, %61, %cst_31 {dimension_numbers = #tpu.dot_dimension_numbers<[1], [0], [0], [1], [0, 0, 1, 1], [], []>} : vector<8x128xf32>, vector<128x512xf32>, vector<8x512xf32> -> vector<8x512xf32>
    %63 = arith.addf %60, %62 : vector<8x512xf32>
    %64 = vector.extract_strided_slice %63 {offsets = [0, 0], sizes = [8, 384], strides = [1, 1]} : vector<8x512xf32> to vector<8x384xf32>
    %65 = arith.negf %64 : vector<8x384xf32>
    %66 = math.exp %65 : vector<8x384xf32>
    %cst_32 = arith.constant 1.000000e+00 : f32
    %67 = vector.broadcast %cst_32 : f32 to vector<8x384xf32>
    %68 = arith.addf %67, %66 : vector<8x384xf32>
    %69 = arith.divf %67, %68 : vector<8x384xf32>
    %70 = vector.extract_strided_slice %69 {offsets = [0, 0], sizes = [8, 128], strides = [1, 1]} : vector<8x384xf32> to vector<8x128xf32>
    %71 = vector.extract_strided_slice %69 {offsets = [0, 128], sizes = [8, 128], strides = [1, 1]} : vector<8x384xf32> to vector<8x128xf32>
    %72 = vector.extract_strided_slice %69 {offsets = [0, 256], sizes = [8, 128], strides = [1, 1]} : vector<8x384xf32> to vector<8x128xf32>
    %73 = vector.extract_strided_slice %63 {offsets = [0, 384], sizes = [8, 128], strides = [1, 1]} : vector<8x512xf32> to vector<8x128xf32>
    %74 = math.tanh %73 : vector<8x128xf32>
    %75 = arith.mulf %71, %55 : vector<8x128xf32>
    %76 = arith.mulf %70, %74 : vector<8x128xf32>
    %77 = arith.addf %75, %76 : vector<8x128xf32>
    %78 = math.tanh %77 : vector<8x128xf32>
    %79 = arith.mulf %72, %78 : vector<8x128xf32>
    %c3_i32 = arith.constant 3 : i32
    %80 = arith.index_cast %c3_i32 : i32 to index
    %c0_33 = arith.constant 0 : index
    %c0_34 = arith.constant 0 : index
    %81 = vector.load %arg7[%80, %c0_33, %c0_34] : memref<8x8x512xf32, #tpu.memory_space<vmem>>, vector<1x8x512xf32>
    %82 = vector.shape_cast %81 : vector<1x8x512xf32> to vector<8x512xf32>
    %c0_35 = arith.constant 0 : index
    %c0_36 = arith.constant 0 : index
    %83 = vector.load %arg4[%c0_35, %c0_36] : memref<128x512xf32, #tpu.memory_space<vmem>>, vector<128x512xf32>
    %cst_37 = arith.constant dense<0.000000e+00> : vector<8x512xf32>
    %84 = tpu.matmul %79, %83, %cst_37 {dimension_numbers = #tpu.dot_dimension_numbers<[1], [0], [0], [1], [0, 0, 1, 1], [], []>} : vector<8x128xf32>, vector<128x512xf32>, vector<8x512xf32> -> vector<8x512xf32>
    %85 = arith.addf %82, %84 : vector<8x512xf32>
    %86 = vector.extract_strided_slice %85 {offsets = [0, 0], sizes = [8, 384], strides = [1, 1]} : vector<8x512xf32> to vector<8x384xf32>
    %87 = arith.negf %86 : vector<8x384xf32>
    %88 = math.exp %87 : vector<8x384xf32>
    %cst_38 = arith.constant 1.000000e+00 : f32
    %89 = vector.broadcast %cst_38 : f32 to vector<8x384xf32>
    %90 = arith.addf %89, %88 : vector<8x384xf32>
    %91 = arith.divf %89, %90 : vector<8x384xf32>
    %92 = vector.extract_strided_slice %91 {offsets = [0, 0], sizes = [8, 128], strides = [1, 1]} : vector<8x384xf32> to vector<8x128xf32>
    %93 = vector.extract_strided_slice %91 {offsets = [0, 128], sizes = [8, 128], strides = [1, 1]} : vector<8x384xf32> to vector<8x128xf32>
    %94 = vector.extract_strided_slice %91 {offsets = [0, 256], sizes = [8, 128], strides = [1, 1]} : vector<8x384xf32> to vector<8x128xf32>
    %95 = vector.extract_strided_slice %85 {offsets = [0, 384], sizes = [8, 128], strides = [1, 1]} : vector<8x512xf32> to vector<8x128xf32>
    %96 = math.tanh %95 : vector<8x128xf32>
    %97 = arith.mulf %93, %77 : vector<8x128xf32>
    %98 = arith.mulf %92, %96 : vector<8x128xf32>
    %99 = arith.addf %97, %98 : vector<8x128xf32>
    %100 = math.tanh %99 : vector<8x128xf32>
    %101 = arith.mulf %94, %100 : vector<8x128xf32>
    %c4_i32 = arith.constant 4 : i32
    %102 = arith.index_cast %c4_i32 : i32 to index
    %c0_39 = arith.constant 0 : index
    %c0_40 = arith.constant 0 : index
    %103 = vector.load %arg7[%102, %c0_39, %c0_40] : memref<8x8x512xf32, #tpu.memory_space<vmem>>, vector<1x8x512xf32>
    %104 = vector.shape_cast %103 : vector<1x8x512xf32> to vector<8x512xf32>
    %c0_41 = arith.constant 0 : index
    %c0_42 = arith.constant 0 : index
    %105 = vector.load %arg4[%c0_41, %c0_42] : memref<128x512xf32, #tpu.memory_space<vmem>>, vector<128x512xf32>
    %cst_43 = arith.constant dense<0.000000e+00> : vector<8x512xf32>
    %106 = tpu.matmul %101, %105, %cst_43 {dimension_numbers = #tpu.dot_dimension_numbers<[1], [0], [0], [1], [0, 0, 1, 1], [], []>} : vector<8x128xf32>, vector<128x512xf32>, vector<8x512xf32> -> vector<8x512xf32>
    %107 = arith.addf %104, %106 : vector<8x512xf32>
    %108 = vector.extract_strided_slice %107 {offsets = [0, 0], sizes = [8, 384], strides = [1, 1]} : vector<8x512xf32> to vector<8x384xf32>
    %109 = arith.negf %108 : vector<8x384xf32>
    %110 = math.exp %109 : vector<8x384xf32>
    %cst_44 = arith.constant 1.000000e+00 : f32
    %111 = vector.broadcast %cst_44 : f32 to vector<8x384xf32>
    %112 = arith.addf %111, %110 : vector<8x384xf32>
    %113 = arith.divf %111, %112 : vector<8x384xf32>
    %114 = vector.extract_strided_slice %113 {offsets = [0, 0], sizes = [8, 128], strides = [1, 1]} : vector<8x384xf32> to vector<8x128xf32>
    %115 = vector.extract_strided_slice %113 {offsets = [0, 128], sizes = [8, 128], strides = [1, 1]} : vector<8x384xf32> to vector<8x128xf32>
    %116 = vector.extract_strided_slice %113 {offsets = [0, 256], sizes = [8, 128], strides = [1, 1]} : vector<8x384xf32> to vector<8x128xf32>
    %117 = vector.extract_strided_slice %107 {offsets = [0, 384], sizes = [8, 128], strides = [1, 1]} : vector<8x512xf32> to vector<8x128xf32>
    %118 = math.tanh %117 : vector<8x128xf32>
    %119 = arith.mulf %115, %99 : vector<8x128xf32>
    %120 = arith.mulf %114, %118 : vector<8x128xf32>
    %121 = arith.addf %119, %120 : vector<8x128xf32>
    %122 = math.tanh %121 : vector<8x128xf32>
    %123 = arith.mulf %116, %122 : vector<8x128xf32>
    %c5_i32 = arith.constant 5 : i32
    %124 = arith.index_cast %c5_i32 : i32 to index
    %c0_45 = arith.constant 0 : index
    %c0_46 = arith.constant 0 : index
    %125 = vector.load %arg7[%124, %c0_45, %c0_46] : memref<8x8x512xf32, #tpu.memory_space<vmem>>, vector<1x8x512xf32>
    %126 = vector.shape_cast %125 : vector<1x8x512xf32> to vector<8x512xf32>
    %c0_47 = arith.constant 0 : index
    %c0_48 = arith.constant 0 : index
    %127 = vector.load %arg4[%c0_47, %c0_48] : memref<128x512xf32, #tpu.memory_space<vmem>>, vector<128x512xf32>
    %cst_49 = arith.constant dense<0.000000e+00> : vector<8x512xf32>
    %128 = tpu.matmul %123, %127, %cst_49 {dimension_numbers = #tpu.dot_dimension_numbers<[1], [0], [0], [1], [0, 0, 1, 1], [], []>} : vector<8x128xf32>, vector<128x512xf32>, vector<8x512xf32> -> vector<8x512xf32>
    %129 = arith.addf %126, %128 : vector<8x512xf32>
    %130 = vector.extract_strided_slice %129 {offsets = [0, 0], sizes = [8, 384], strides = [1, 1]} : vector<8x512xf32> to vector<8x384xf32>
    %131 = arith.negf %130 : vector<8x384xf32>
    %132 = math.exp %131 : vector<8x384xf32>
    %cst_50 = arith.constant 1.000000e+00 : f32
    %133 = vector.broadcast %cst_50 : f32 to vector<8x384xf32>
    %134 = arith.addf %133, %132 : vector<8x384xf32>
    %135 = arith.divf %133, %134 : vector<8x384xf32>
    %136 = vector.extract_strided_slice %135 {offsets = [0, 0], sizes = [8, 128], strides = [1, 1]} : vector<8x384xf32> to vector<8x128xf32>
    %137 = vector.extract_strided_slice %135 {offsets = [0, 128], sizes = [8, 128], strides = [1, 1]} : vector<8x384xf32> to vector<8x128xf32>
    %138 = vector.extract_strided_slice %135 {offsets = [0, 256], sizes = [8, 128], strides = [1, 1]} : vector<8x384xf32> to vector<8x128xf32>
    %139 = vector.extract_strided_slice %129 {offsets = [0, 384], sizes = [8, 128], strides = [1, 1]} : vector<8x512xf32> to vector<8x128xf32>
    %140 = math.tanh %139 : vector<8x128xf32>
    %141 = arith.mulf %137, %121 : vector<8x128xf32>
    %142 = arith.mulf %136, %140 : vector<8x128xf32>
    %143 = arith.addf %141, %142 : vector<8x128xf32>
    %144 = math.tanh %143 : vector<8x128xf32>
    %145 = arith.mulf %138, %144 : vector<8x128xf32>
    %c6_i32 = arith.constant 6 : i32
    %146 = arith.index_cast %c6_i32 : i32 to index
    %c0_51 = arith.constant 0 : index
    %c0_52 = arith.constant 0 : index
    %147 = vector.load %arg7[%146, %c0_51, %c0_52] : memref<8x8x512xf32, #tpu.memory_space<vmem>>, vector<1x8x512xf32>
    %148 = vector.shape_cast %147 : vector<1x8x512xf32> to vector<8x512xf32>
    %c0_53 = arith.constant 0 : index
    %c0_54 = arith.constant 0 : index
    %149 = vector.load %arg4[%c0_53, %c0_54] : memref<128x512xf32, #tpu.memory_space<vmem>>, vector<128x512xf32>
    %cst_55 = arith.constant dense<0.000000e+00> : vector<8x512xf32>
    %150 = tpu.matmul %145, %149, %cst_55 {dimension_numbers = #tpu.dot_dimension_numbers<[1], [0], [0], [1], [0, 0, 1, 1], [], []>} : vector<8x128xf32>, vector<128x512xf32>, vector<8x512xf32> -> vector<8x512xf32>
    %151 = arith.addf %148, %150 : vector<8x512xf32>
    %152 = vector.extract_strided_slice %151 {offsets = [0, 0], sizes = [8, 384], strides = [1, 1]} : vector<8x512xf32> to vector<8x384xf32>
    %153 = arith.negf %152 : vector<8x384xf32>
    %154 = math.exp %153 : vector<8x384xf32>
    %cst_56 = arith.constant 1.000000e+00 : f32
    %155 = vector.broadcast %cst_56 : f32 to vector<8x384xf32>
    %156 = arith.addf %155, %154 : vector<8x384xf32>
    %157 = arith.divf %155, %156 : vector<8x384xf32>
    %158 = vector.extract_strided_slice %157 {offsets = [0, 0], sizes = [8, 128], strides = [1, 1]} : vector<8x384xf32> to vector<8x128xf32>
    %159 = vector.extract_strided_slice %157 {offsets = [0, 128], sizes = [8, 128], strides = [1, 1]} : vector<8x384xf32> to vector<8x128xf32>
    %160 = vector.extract_strided_slice %157 {offsets = [0, 256], sizes = [8, 128], strides = [1, 1]} : vector<8x384xf32> to vector<8x128xf32>
    %161 = vector.extract_strided_slice %151 {offsets = [0, 384], sizes = [8, 128], strides = [1, 1]} : vector<8x512xf32> to vector<8x128xf32>
    %162 = math.tanh %161 : vector<8x128xf32>
    %163 = arith.mulf %159, %143 : vector<8x128xf32>
    %164 = arith.mulf %158, %162 : vector<8x128xf32>
    %165 = arith.addf %163, %164 : vector<8x128xf32>
    %166 = math.tanh %165 : vector<8x128xf32>
    %167 = arith.mulf %160, %166 : vector<8x128xf32>
    %c7_i32 = arith.constant 7 : i32
    %168 = arith.index_cast %c7_i32 : i32 to index
    %c0_57 = arith.constant 0 : index
    %c0_58 = arith.constant 0 : index
    %169 = vector.load %arg7[%168, %c0_57, %c0_58] : memref<8x8x512xf32, #tpu.memory_space<vmem>>, vector<1x8x512xf32>
    %170 = vector.shape_cast %169 : vector<1x8x512xf32> to vector<8x512xf32>
    %c0_59 = arith.constant 0 : index
    %c0_60 = arith.constant 0 : index
    %171 = vector.load %arg4[%c0_59, %c0_60] : memref<128x512xf32, #tpu.memory_space<vmem>>, vector<128x512xf32>
    %cst_61 = arith.constant dense<0.000000e+00> : vector<8x512xf32>
    %172 = tpu.matmul %167, %171, %cst_61 {dimension_numbers = #tpu.dot_dimension_numbers<[1], [0], [0], [1], [0, 0, 1, 1], [], []>} : vector<8x128xf32>, vector<128x512xf32>, vector<8x512xf32> -> vector<8x512xf32>
    %173 = arith.addf %170, %172 : vector<8x512xf32>
    %174 = vector.extract_strided_slice %173 {offsets = [0, 0], sizes = [8, 384], strides = [1, 1]} : vector<8x512xf32> to vector<8x384xf32>
    %175 = arith.negf %174 : vector<8x384xf32>
    %176 = math.exp %175 : vector<8x384xf32>
    %cst_62 = arith.constant 1.000000e+00 : f32
    %177 = vector.broadcast %cst_62 : f32 to vector<8x384xf32>
    %178 = arith.addf %177, %176 : vector<8x384xf32>
    %179 = arith.divf %177, %178 : vector<8x384xf32>
    %180 = vector.extract_strided_slice %179 {offsets = [0, 0], sizes = [8, 128], strides = [1, 1]} : vector<8x384xf32> to vector<8x128xf32>
    %181 = vector.extract_strided_slice %179 {offsets = [0, 128], sizes = [8, 128], strides = [1, 1]} : vector<8x384xf32> to vector<8x128xf32>
    %182 = vector.extract_strided_slice %179 {offsets = [0, 256], sizes = [8, 128], strides = [1, 1]} : vector<8x384xf32> to vector<8x128xf32>
    %183 = vector.extract_strided_slice %173 {offsets = [0, 384], sizes = [8, 128], strides = [1, 1]} : vector<8x512xf32> to vector<8x128xf32>
    %184 = math.tanh %183 : vector<8x128xf32>
    %185 = arith.mulf %181, %165 : vector<8x128xf32>
    %186 = arith.mulf %180, %184 : vector<8x128xf32>
    %187 = arith.addf %185, %186 : vector<8x128xf32>
    %188 = math.tanh %187 : vector<8x128xf32>
    %189 = arith.mulf %182, %188 : vector<8x128xf32>
    %c8_i32 = arith.constant 8 : i32
    %c0_63 = arith.constant 0 : index
    %c0_64 = arith.constant 0 : index
    %190 = vector.load %arg8[%c0_63, %c0_64] : memref<8x128xf32, #tpu.memory_space<vmem>>, vector<8x128xf32>
    tpu.vector_store %arg8[%c0_63, %c0_64], %189 {strides = array<i32>} : memref<8x128xf32, #tpu.memory_space<vmem>>, vector<8x128xf32>,
    %c0_65 = arith.constant 0 : index
    %c0_66 = arith.constant 0 : index
    %191 = vector.load %arg9[%c0_65, %c0_66] : memref<8x128xf32, #tpu.memory_space<vmem>>, vector<8x128xf32>
    tpu.vector_store %arg9[%c0_65, %c0_66], %187 {strides = array<i32>} : memref<8x128xf32, #tpu.memory_space<vmem>>, vector<8x128xf32>,
    %c0_i32_67 = arith.constant 0 : i32
    %192 = arith.cmpi eq, %arg1, %c0_i32_67 : i32
    %193 = arith.extui %192 : i1 to i32
    %c0_i32_68 = arith.constant 0 : i32
    %194 = arith.cmpi ne, %193, %c0_i32_68 : i32
    scf.if %194 {
      %c0_69 = arith.constant 0 : index
      %c0_70 = arith.constant 0 : index
      %195 = vector.load %arg6[%c0_69, %c0_70] : memref<8x128xf32, #tpu.memory_space<vmem>>, vector<8x128xf32>
      tpu.vector_store %arg6[%c0_69, %c0_70], %189 {strides = array<i32>} : memref<8x128xf32, #tpu.memory_space<vmem>>, vector<8x128xf32>,
    } else {
    }
    return
  }
  func.func @transform_0(%arg0: i32, %arg1: i32) -> (i32, i32, i32) {
    %c0_i32 = arith.constant 0 : i32
    %c0_i32_0 = arith.constant 0 : i32
    return %arg1, %arg0, %c0_i32 : i32, i32, i32
  }
  func.func @transform_1(%arg0: i32, %arg1: i32) -> (i32, i32) {
    %c0_i32 = arith.constant 0 : i32
    %c0_i32_0 = arith.constant 0 : i32
    %c0_i32_1 = arith.constant 0 : i32
    return %c0_i32, %c0_i32_0 : i32, i32
  }
  func.func @transform_2(%arg0: i32, %arg1: i32) -> (i32, i32) {
    %c0_i32 = arith.constant 0 : i32
    %c0_i32_0 = arith.constant 0 : i32
    %c0_i32_1 = arith.constant 0 : i32
    return %c0_i32, %c0_i32_0 : i32, i32
  }
  func.func @transform_3(%arg0: i32, %arg1: i32) -> (i32, i32) {
    %c0_i32 = arith.constant 0 : i32
    %c0_i32_0 = arith.constant 0 : i32
    %c0_i32_1 = arith.constant 0 : i32
    return %c0_i32, %c0_i32_0 : i32, i32
  }
  func.func @transform_4(%arg0: i32, %arg1: i32) -> (i32, i32) {
    %c0_i32 = arith.constant 0 : i32
    %c0_i32_0 = arith.constant 0 : i32
    return %arg0, %c0_i32 : i32, i32
  }
}

</mosaic_0001>

<bundles_post_ra>
// kernel: lstm_forward.1
= control target key start
LH: loop header
LB: loop body
LE: loop exit
PB: predicated region body
PF: predicated region fallthrough
CT: control target
= control target key end

     0   :  { %v3511_v3 = vmov 0.0   ;;  %vm63_vm0 = vcmask 261120   ;;  %s3506_s1 = inlined_call_operand.vmem [shape: f32[32,512], index: 1, kind: input, shape index: {}]   ;;  %s3507_s0 = inlined_call_operand.vmem [shape: f32[8,8,32], index: 0, kind: input, shape index: {}]   ;;  %s3508_s2 = inlined_call_operand.vmem [shape: f32[128,512], index: 2, kind: input, shape index: {}]   ;;  %s3509_s3 = inlined_call_operand.vmem [shape: f32[1,512], index: 3, kind: input, shape index: {}]   ;;  %s3510_s4 = inlined_call_operand.vmem [shape: f32[8,128], index: 4, kind: output, shape index: {}]  }
   0x1   :  { %v38_v0 = vld [vmem:[%s3506_s1 + $0x68] sm:$0xff]  ;;  %v40_v1 = vld [vmem:[%s3506_s1 + $0x78] sm:$0xff]  ;;  %v37_v2 = vld [vmem:[%s3506_s1 + $0x60] sm:$0xff]  ;;  %152 = vmatprep.mubr.f32.mxu0 %v3511_v3  ;;  %265 = vmatprep.mubr.f32.mxu1 %v3511_v3 }
   0x2   :  { %112 = vmatprep.subr.mxu0 %v38_v0  ;;  %225 = vmatprep.subr.mxu1 %v40_v1  ;;  %v39_v4 = vld [vmem:[%s3506_s1 + $0x70] sm:$0xff]  ;;  %v34_v5 = vld [vmem:[%s3506_s1 + $0x48] sm:$0xff]  ;;  %v36_v6 = vld [vmem:[%s3506_s1 + $0x58] sm:$0xff] }
   0x3   :  { %113 = vmatpush1.msra.mxu0 %v37_v2  ;;  %226 = vmatpush1.msra.mxu1 %v39_v4  ;;  %v33_v7 = vld [vmem:[%s3506_s1 + $0x40] sm:$0xff]  ;;  %v35_v8 = vld [vmem:[%s3506_s1 + $0x50] sm:$0xff]  ;;  %v30_v9 = vld [vmem:[%s3506_s1 + $0x28] sm:$0xff] }
   0x4   :  { %114 = vmatprep.subr.mxu0 %v34_v5  ;;  %227 = vmatprep.subr.mxu1 %v36_v6  ;;  %v32_v10 = vld [vmem:[%s3506_s1 + $0x38] sm:$0xff]  ;;  %v29_v11 = vld [vmem:[%s3506_s1 + $0x20] sm:$0xff]  ;;  %v31_v12 = vld [vmem:[%s3506_s1 + $0x30] sm:$0xff] }
   0x5   :  { %115 = vmatpush1.msra.mxu0 %v33_v7  ;;  %228 = vmatpush1.msra.mxu1 %v35_v8  ;;  %v26_v13 = vld [vmem:[%s3506_s1 + $0x8] sm:$0xff]  ;;  %v28_v14 = vld [vmem:[%s3506_s1 + $0x18] sm:$0xff]  ;;  %v25_v15 = vld [vmem:[%s3506_s1] sm:$0xff] }
   0x6   :  { %116 = vmatprep.subr.mxu0 %v30_v9  ;;  %229 = vmatprep.subr.mxu1 %v32_v10  ;;  %v27_v16 = vld [vmem:[%s3506_s1 + $0x10] sm:$0xff]  ;;  %v17_v17 = vld [vmem:[%s3507_s0] sm:$0xff]  ;;  %v2142_v18 = vld [vmem:[%s3508_s2 + $0x1e8] sm:$0xff] }
   0x7   :  { %117 = vmatpush1.msra.mxu0 %v29_v11  ;;  %230 = vmatpush1.msra.mxu1 %v31_v12  ;;  %3599 = vst [vmem:[#allocation5_spill] sm:$0xff] %v2142_v18  ;;  %v2147_v19 = vld [vmem:[%s3508_s2 + $0x1f8] sm:$0xff]  ;;  %v2152_v20 = vld [vmem:[%s3508_s2 + $0x1e0] sm:$0xff]  ;;  %v2157_v21 = vld [vmem:[%s3508_s2 + $0x1f0] sm:$0xff] }
   0x8   :  { %118 = vmatprep.subr.mxu0 %v26_v13  ;;  %231 = vmatprep.subr.mxu1 %v28_v14  ;;  %3600 = vst [vmem:[#allocation6_spill] sm:$0xff] %v2147_v19  ;;  %v2164_v22 = vld [vmem:[%s3508_s2 + $0x1c8] sm:$0xff]  ;;  %v2169_v23 = vld [vmem:[%s3508_s2 + $0x1d8] sm:$0xff]  ;;  %v2178_v24 = vld [vmem:[%s3508_s2 + $0x1c0] sm:$0xff] }
   0x9   :  { %119 = vmatpush1.msra.mxu0 %v25_v15  ;;  %232 = vmatpush1.msra.mxu1 %v27_v16  ;;  %v2183_v25 = vld [vmem:[%s3508_s2 + $0x1d0] sm:$0xff]  ;;  %v18_v26 = vld [vmem:[%s3507_s0 + $0x8] sm:$0xff]  ;;  %v2200_v28 = vld [vmem:[%s3508_s2 + $0x1b8] sm:$0xff] }
   0xa   :  { %1827 = vmatmul.mubr.msk.f32.vlgmr.msra.gmra.mxu0 %vm63_vm0, %v17_v17  ;;  %1835 = vmatmul.mubr.msk.f32.vlgmr.msra.gmra.mxu1 %vm63_vm0, %v17_v17  ;;  %v2195_v27 = vld [vmem:[%s3508_s2 + $0x1a8] sm:$0xff]  ;;  %v2207_v29 = vld [vmem:[%s3508_s2 + $0x1a0] sm:$0xff]  ;;  %v2212_v30 = vld [vmem:[%s3508_s2 + $0x1b0] sm:$0xff] }
   0xb   :  { %422 = vmatprep.subr.mxu0 %v2142_v18  ;;  %493 = vmatprep.subr.mxu1 %v2147_v19  ;;  %v2219_v31 = vld [vmem:[%s3508_s2 + $0x188] sm:$0xff]  ;;  %v2224_v32 = vld [vmem:[%s3508_s2 + $0x198] sm:$0xff]  ;;  %v2233_v33 = vld [vmem:[%s3508_s2 + $0x180] sm:$0xff] }
   0xc   :  { %423 = vmatpush1.msra.mxu0 %v2152_v20  ;;  %494 = vmatpush1.msra.mxu1 %v2157_v21  ;;  %v2238_v34 = vld [vmem:[%s3508_s2 + $0x190] sm:$0xff]  ;;  %v2250_v36 = vld [vmem:[%s3508_s2 + $0x168] sm:$0xff]  ;;  %v2255_v37 = vld [vmem:[%s3508_s2 + $0x178] sm:$0xff] }
   0xd   :  { %424 = vmatprep.subr.mxu0 %v2164_v22  ;;  %495 = vmatprep.subr.mxu1 %v2169_v23  ;;  %v19_v35 = vld [vmem:[%s3507_s0 + $0x10] sm:$0xff]  ;;  %v2262_v38 = vld [vmem:[%s3508_s2 + $0x160] sm:$0xff]  ;;  %v2274_v40 = vld [vmem:[%s3508_s2 + $0x148] sm:$0xff] }
   0xe   :  { %158 = vmatprep.mubr.f32.mxu0 %v3511_v3  ;;  %271 = vmatprep.mubr.f32.mxu1 %v3511_v3  ;;  %v2267_v39 = vld [vmem:[%s3508_s2 + $0x170] sm:$0xff]  ;;  %v2279_v41 = vld [vmem:[%s3508_s2 + $0x158] sm:$0xff]  ;;  %v2288_v42 = vld [vmem:[%s3508_s2 + $0x140] sm:$0xff] }
   0xf   :  { %425 = vmatpush1.msra.mxu0 %v2178_v24  ;;  %496 = vmatpush1.msra.mxu1 %v2183_v25  ;;  %v2293_v43 = vld [vmem:[%s3508_s2 + $0x150] sm:$0xff]  ;;  %v20_v44 = vld [vmem:[%s3507_s0 + $0x18] sm:$0xff]  ;;  %v2305_v45 = vld [vmem:[%s3508_s2 + $0x128] sm:$0xff] }
  0x10   :  { %1828 = vmatmul.mubr.msk.f32.gmra.mxu0 %vm63_vm0, %v18_v26  ;;  %1836 = vmatmul.mubr.msk.f32.gmra.mxu1 %vm63_vm0, %v18_v26  ;;  %v2310_v46 = vld [vmem:[%s3508_s2 + $0x138] sm:$0xff]  ;;  %v2317_v47 = vld [vmem:[%s3508_s2 + $0x120] sm:$0xff]  ;;  %v2322_v48 = vld [vmem:[%s3508_s2 + $0x130] sm:$0xff] }
  0x11   :  { %426 = vmatprep.subr.mxu0 %v2195_v27  ;;  %497 = vmatprep.subr.mxu1 %v2200_v28  ;;  %v2329_v49 = vld [vmem:[%s3508_s2 + $0x108] sm:$0xff]  ;;  %v2334_v50 = vld [vmem:[%s3508_s2 + $0x118] sm:$0xff]  ;;  %v2343_v51 = vld [vmem:[%s3508_s2 + $0x100] sm:$0xff] }
  0x12   :  { %427 = vmatpush1.msra.mxu0 %v2207_v29  ;;  %498 = vmatpush1.msra.mxu1 %v2212_v30  ;;  %v2348_v52 = vld [vmem:[%s3508_s2 + $0x110] sm:$0xff]  ;;  %v21_v53 = vld [vmem:[%s3507_s0 + $0x20] sm:$0xff]  ;;  %v2360_v54 = vld [vmem:[%s3508_s2 + $0xe8] sm:$0xff] }
  0x13   :  { %428 = vmatprep.subr.mxu0 %v2219_v31  ;;  %499 = vmatprep.subr.mxu1 %v2224_v32  ;;  %v2365_v55 = vld [vmem:[%s3508_s2 + $0xf8] sm:$0xff]  ;;  %v2372_v56 = vld [vmem:[%s3508_s2 + $0xe0] sm:$0xff]  ;;  %v2377_v57 = vld [vmem:[%s3508_s2 + $0xf0] sm:$0xff] }
  0x14   :  { %164 = vmatprep.mubr.f32.mxu0 %v3511_v3  ;;  %277 = vmatprep.mubr.f32.mxu1 %v3511_v3  ;;  %v2384_v58 = vld [vmem:[%s3508_s2 + $0xc8] sm:$0xff]  ;;  %v2389_v59 = vld [vmem:[%s3508_s2 + $0xd8] sm:$0xff]  ;;  %v2398_v60 = vld [vmem:[%s3508_s2 + $0xc0] sm:$0xff] }
  0x15   :  { %429 = vmatpush1.msra.mxu0 %v2233_v33  ;;  %500 = vmatpush1.msra.mxu1 %v2238_v34  ;;  %v2403_v61 = vld [vmem:[%s3508_s2 + $0xd0] sm:$0xff]  ;;  %v22_v62 = vld [vmem:[%s3507_s0 + $0x28] sm:$0xff]  ;;  %v2420_v0 = vld [vmem:[%s3508_s2 + $0xb8] sm:$0xff] }
  0x16   :  { %1829 = vmatmul.mubr.msk.f32.gmra.mxu0 %vm63_vm0, %v19_v35  ;;  %1837 = vmatmul.mubr.msk.f32.gmra.mxu1 %vm63_vm0, %v19_v35  ;;  %v2415_v63 = vld [vmem:[%s3508_s2 + $0xa8] sm:$0xff]  ;;  %v2427_v1 = vld [vmem:[%s3508_s2 + $0xa0] sm:$0xff]  ;;  %v2432_v2 = vld [vmem:[%s3508_s2 + $0xb0] sm:$0xff] }
  0x17   :  { %430 = vmatprep.subr.mxu0 %v2250_v36  ;;  %501 = vmatprep.subr.mxu1 %v2255_v37  ;;  %v2439_v4 = vld [vmem:[%s3508_s2 + $0x88] sm:$0xff]  ;;  %v2444_v5 = vld [vmem:[%s3508_s2 + $0x98] sm:$0xff]  ;;  %v2453_v6 = vld [vmem:[%s3508_s2 + $0x80] sm:$0xff] }
  0x18   :  { %431 = vmatpush1.msra.mxu0 %v2262_v38  ;;  %502 = vmatpush1.msra.mxu1 %v2267_v39  ;;  %3601 = vst [vmem:[#allocation7_spill] sm:$0xff] %v2439_v4  ;;  %3602 = vst [vmem:[#allocation8_spill] sm:$0xff] %v2444_v5  ;;  %v2458_v7 = vld [vmem:[%s3508_s2 + $0x90] sm:$0xff]  ;;  %v2470_v9 = vld [vmem:[%s3508_s2 + $0x68] sm:$0xff] }
  0x19   :  { %432 = vmatprep.subr.mxu0 %v2274_v40  ;;  %503 = vmatprep.subr.mxu1 %v2279_v41  ;;  %3603 = vst [vmem:[#allocation9_spill] sm:$0xff] %v2453_v6  ;;  %3604 = vst [vmem:[#allocation10_spill] sm:$0xff] %v2458_v7  ;;  %v23_v8 = vld [vmem:[%s3507_s0 + $0x30] sm:$0xff]  ;;  %v2475_v10 = vld [vmem:[%s3508_s2 + $0x78] sm:$0xff] }
  0x1a   :  { %170 = vmatprep.mubr.f32.mxu0 %v3511_v3  ;;  %283 = vmatprep.mubr.f32.mxu1 %v3511_v3  ;;  %3605 = vst [vmem:[#allocation11_spill] sm:$0xff] %v2470_v9  ;;  %3606 = vst [vmem:[#allocation12_spill] sm:$0xff] %v2475_v10  ;;  %v2482_v11 = vld [vmem:[%s3508_s2 + $0x60] sm:$0xff]  ;;  %v2487_v12 = vld [vmem:[%s3508_s2 + $0x70] sm:$0xff] }
  0x1b   :  { %433 = vmatpush1.msra.mxu0 %v2288_v42  ;;  %504 = vmatpush1.msra.mxu1 %v2293_v43  ;;  %3607 = vst [vmem:[#allocation13_spill] sm:$0xff] %v2482_v11  ;;  %3608 = vst [vmem:[#allocation14_spill] sm:$0xff] %v2487_v12  ;;  %v2494_v13 = vld [vmem:[%s3508_s2 + $0x48] sm:$0xff]  ;;  %v2499_v14 = vld [vmem:[%s3508_s2 + $0x58] sm:$0xff] }
  0x1c   :  { %1830 = vmatmul.mubr.msk.f32.gmra.mxu0 %vm63_vm0, %v20_v44  ;;  %1838 = vmatmul.mubr.msk.f32.gmra.mxu1 %vm63_vm0, %v20_v44  ;;  %3609 = vst [vmem:[#allocation15_spill] sm:$0xff] %v2494_v13  ;;  %3610 = vst [vmem:[#allocation16_spill] sm:$0xff] %v2499_v14  ;;  %v2508_v15 = vld [vmem:[%s3508_s2 + $0x40] sm:$0xff]  ;;  %v2513_v16 = vld [vmem:[%s3508_s2 + $0x50] sm:$0xff] }
  0x1d   :  { %434 = vmatprep.subr.mxu0 %v2305_v45  ;;  %505 = vmatprep.subr.mxu1 %v2310_v46  ;;  %3611 = vst [vmem:[#allocation17_spill] sm:$0xff] %v2508_v15  ;;  %3612 = vst [vmem:[#allocation18_spill] sm:$0xff] %v2513_v16  ;;  %v24_v17 = vld [vmem:[%s3507_s0 + $0x38] sm:$0xff]  ;;  %v2525_v26 = vld [vmem:[%s3508_s2 + $0x28] sm:$0xff] }
  0x1e   :  { %435 = vmatpush1.msra.mxu0 %v2317_v47  ;;  %506 = vmatpush1.msra.mxu1 %v2322_v48  ;;  %3613 = vst [vmem:[#allocation19_spill] sm:$0xff] %v2525_v26  ;;  %v2530_v35 = vld [vmem:[%s3508_s2 + $0x38] sm:$0xff]  ;;  %v2537_v44 = vld [vmem:[%s3508_s2 + $0x20] sm:$0xff] }
  0x1f   :  { %436 = vmatprep.subr.mxu0 %v2329_v49  ;;  %507 = vmatprep.subr.mxu1 %v2334_v50  ;;  %3614 = vst [vmem:[#allocation20_spill] sm:$0xff] %v2530_v35  ;;  %3615 = vst [vmem:[#allocation21_spill] sm:$0xff] %v2537_v44 }
  0x20   :  { %176 = vmatprep.mubr.f32.mxu0 %v3511_v3  ;;  %289 = vmatprep.mubr.f32.mxu1 %v3511_v3 }
  0x21   :  { %437 = vmatpush1.msra.mxu0 %v2343_v51  ;;  %508 = vmatpush1.msra.mxu1 %v2348_v52 }
  0x22   :  { %1831 = vmatmul.mubr.msk.f32.gmra.mxu0 %vm63_vm0, %v21_v53  ;;  %1839 = vmatmul.mubr.msk.f32.gmra.mxu1 %vm63_vm0, %v21_v53  ;;  %v2542_v53 = vld [vmem:[%s3508_s2 + $0x30] sm:$0xff] }
  0x23   :  { %438 = vmatprep.subr.mxu0 %v2360_v54  ;;  %509 = vmatprep.subr.mxu1 %v2365_v55  ;;  %3616 = vst [vmem:[#allocation22_spill] sm:$0xff] %v2542_v53 }
  0x24   :  { %439 = vmatpush1.msra.mxu0 %v2372_v56  ;;  %510 = vmatpush1.msra.mxu1 %v2377_v57 }
  0x25   :  { %440 = vmatprep.subr.mxu0 %v2384_v58  ;;  %511 = vmatprep.subr.mxu1 %v2389_v59 }
  0x26   :  { %182 = vmatprep.mubr.f32.mxu0 %v3511_v3  ;;  %295 = vmatprep.mubr.f32.mxu1 %v3511_v3 }
  0x27   :  { %441 = vmatpush1.msra.mxu0 %v2398_v60  ;;  %512 = vmatpush1.msra.mxu1 %v2403_v61 }
  0x28   :  { %1832 = vmatmul.mubr.msk.f32.gmra.mxu0 %vm63_vm0, %v22_v62  ;;  %1840 = vmatmul.mubr.msk.f32.gmra.mxu1 %vm63_vm0, %v22_v62  ;;  %v2549_v62 = vld [vmem:[%s3508_s2 + $0x8] sm:$0xff] }
  0x29   :  { %442 = vmatprep.subr.mxu0 %v2415_v63  ;;  %513 = vmatprep.subr.mxu1 %v2420_v0  ;;  %3617 = vst [vmem:[#allocation23_spill] sm:$0xff] %v2549_v62 }
  0x2a   :  { %443 = vmatpush1.msra.mxu0 %v2427_v1  ;;  %514 = vmatpush1.msra.mxu1 %v2432_v2 }
  0x2b   :  { %444 = vmatprep.subr.mxu0 %v2439_v4  ;;  %515 = vmatprep.subr.mxu1 %v2444_v5 }
  0x2c   :  { %188 = vmatprep.mubr.f32.mxu0 %v3511_v3  ;;  %301 = vmatprep.mubr.f32.mxu1 %v3511_v3 }
  0x2d   :  { %445 = vmatpush1.msra.mxu0 %v2453_v6  ;;  %516 = vmatpush1.msra.mxu1 %v2458_v7 }
  0x2e   :  { %1833 = vmatmul.mubr.msk.f32.gmra.mxu0 %vm63_vm0, %v23_v8  ;;  %1841 = vmatmul.mubr.msk.f32.gmra.mxu1 %vm63_vm0, %v23_v8  ;;  %v2554_v8 = vld [vmem:[%s3508_s2 + $0x18] sm:$0xff] }
  0x2f   :  { %446 = vmatprep.subr.mxu0 %v2470_v9  ;;  %517 = vmatprep.subr.mxu1 %v2475_v10  ;;  %3618 = vst [vmem:[#allocation24_spill] sm:$0xff] %v2554_v8 }
  0x30   :  { %447 = vmatpush1.msra.mxu0 %v2482_v11  ;;  %518 = vmatpush1.msra.mxu1 %v2487_v12 }
  0x31   :  { %448 = vmatprep.subr.mxu0 %v2494_v13  ;;  %519 = vmatprep.subr.mxu1 %v2499_v14 }
  0x32   :  { %194 = vmatprep.mubr.f32.mxu0 %v3511_v3  ;;  %307 = vmatprep.mubr.f32.mxu1 %v3511_v3  ;;  %v2561_v3 = vld [vmem:[%s3508_s2] sm:$0xff] }
  0x33   :  { %449 = vmatpush1.msra.mxu0 %v2508_v15  ;;  %520 = vmatpush1.msra.mxu1 %v2513_v16  ;;  %3619 = vst [vmem:[#allocation25_spill] sm:$0xff] %v2561_v3 }
  0x34   :  { %1834 = vmatmul.mubr.msk.f32.gmra.mxu0 %vm63_vm0, %v24_v17  ;;  %1842 = vmatmul.mubr.msk.f32.gmra.mxu1 %vm63_vm0, %v24_v17  ;;  %v2568_v17 = vld [vmem:[%s3508_s2 + $0x10] sm:$0xff] }
  0x35   :  { %450 = vmatprep.subr.mxu0 %v2525_v26  ;;  %521 = vmatprep.subr.mxu1 %v2530_v35  ;;  %3620 = vst [vmem:[#allocation26_spill] sm:$0xff] %v2568_v17  ;;  %v3621_v35 = vmov 0.0  }
  0x36   :  { %451 = vmatpush1.msra.mxu0 %v2537_v44  ;;  %522 = vmatpush1.msra.mxu1 %v2542_v53 }
  0x37   :  { %452 = vmatprep.subr.mxu0 %v2549_v62  ;;  %523 = vmatprep.subr.mxu1 %v2554_v8 }
  0x38   :  { %453 = vmatpush1.msra.mxu0 %v2561_v3  ;;  %486 = vmatprep.mubr.f32.mxu0 %v3621_v35 }
  0x39   :  { %524 = vmatpush1.msra.mxu1 %v2568_v17  ;;  %557 = vmatprep.mubr.f32.mxu1 %v3621_v35 }
  0x3a   :  { %487 = vmatmul.mubr.f32.vlgmr.msra.gmra.mxu0 %v3621_v35  ;;  %558 = vmatmul.mubr.f32.vlgmr.msra.gmra.mxu1 %v3621_v35 }
  0x3b   :  { %597 = vmatprep.subr.mxu0 %v2142_v18  ;;  %668 = vmatprep.subr.mxu1 %v2147_v19 }
  0x3c   :  { %598 = vmatpush1.msra.mxu0 %v2152_v20  ;;  %669 = vmatpush1.msra.mxu1 %v2157_v21 }
  0x3d   :  { %599 = vmatprep.subr.mxu0 %v2164_v22  ;;  %670 = vmatprep.subr.mxu1 %v2169_v23 }
  0x3e   :  { %600 = vmatpush1.msra.mxu0 %v2178_v24  ;;  %671 = vmatpush1.msra.mxu1 %v2183_v25 }
  0x3f   :  { %601 = vmatprep.subr.mxu0 %v2195_v27  ;;  %672 = vmatprep.subr.mxu1 %v2200_v28 }
  0x40   :  { %602 = vmatpush1.msra.mxu0 %v2207_v29  ;;  %673 = vmatpush1.msra.mxu1 %v2212_v30 }
  0x41   :  { %603 = vmatprep.subr.mxu0 %v2219_v31  ;;  %674 = vmatprep.subr.mxu1 %v2224_v32 }
  0x42   :  { %604 = vmatpush1.msra.mxu0 %v2233_v33  ;;  %675 = vmatpush1.msra.mxu1 %v2238_v34 }
  0x43   :  { %605 = vmatprep.subr.mxu0 %v2250_v36  ;;  %676 = vmatprep.subr.mxu1 %v2255_v37 }
  0x44   :  { %606 = vmatpush1.msra.mxu0 %v2262_v38  ;;  %677 = vmatpush1.msra.mxu1 %v2267_v39 }
  0x45   :  { %607 = vmatprep.subr.mxu0 %v2274_v40  ;;  %678 = vmatprep.subr.mxu1 %v2279_v41 }
  0x46   :  { %608 = vmatpush1.msra.mxu0 %v2288_v42  ;;  %679 = vmatpush1.msra.mxu1 %v2293_v43 }
  0x47   :  { %609 = vmatprep.subr.mxu0 %v2305_v45  ;;  %680 = vmatprep.subr.mxu1 %v2310_v46 }
  0x48   :  { %610 = vmatpush1.msra.mxu0 %v2317_v47  ;;  %681 = vmatpush1.msra.mxu1 %v2322_v48 }
  0x49   :  { %611 = vmatprep.subr.mxu0 %v2329_v49  ;;  %682 = vmatprep.subr.mxu1 %v2334_v50 }
  0x4a   :  { %612 = vmatpush1.msra.mxu0 %v2343_v51  ;;  %683 = vmatpush1.msra.mxu1 %v2348_v52 }
  0x4b   :  { %613 = vmatprep.subr.mxu0 %v2360_v54  ;;  %684 = vmatprep.subr.mxu1 %v2365_v55 }
  0x4c   :  { %614 = vmatpush1.msra.mxu0 %v2372_v56  ;;  %685 = vmatpush1.msra.mxu1 %v2377_v57 }
  0x4d   :  { %615 = vmatprep.subr.mxu0 %v2384_v58  ;;  %686 = vmatprep.subr.mxu1 %v2389_v59 }
  0x4e   :  { %616 = vmatpush1.msra.mxu0 %v2398_v60  ;;  %687 = vmatpush1.msra.mxu1 %v2403_v61 }
  0x4f   :  { %617 = vmatprep.subr.mxu0 %v2415_v63  ;;  %688 = vmatprep.subr.mxu1 %v2420_v0 }
  0x50   :  { %618 = vmatpush1.msra.mxu0 %v2427_v1  ;;  %689 = vmatpush1.msra.mxu1 %v2432_v2 }
  0x51   :  { %619 = vmatprep.subr.mxu0 %v2439_v4  ;;  %690 = vmatprep.subr.mxu1 %v2444_v5 }
  0x52   :  { %620 = vmatpush1.msra.mxu0 %v2453_v6  ;;  %691 = vmatpush1.msra.mxu1 %v2458_v7  ;;  %v3622_v6 = vld [vmem:[#allocation20_spill] sm:$0xff] }
  0x53   :  { %621 = vmatprep.subr.mxu0 %v2470_v9  ;;  %692 = vmatprep.subr.mxu1 %v2475_v10 }
  0x54   :  { %622 = vmatpush1.msra.mxu0 %v2482_v11  ;;  %693 = vmatpush1.msra.mxu1 %v2487_v12 }
  0x55   :  { %623 = vmatprep.subr.mxu0 %v2494_v13  ;;  %694 = vmatprep.subr.mxu1 %v2499_v14 }
  0x56   :  { %624 = vmatpush1.msra.mxu0 %v2508_v15  ;;  %695 = vmatpush1.msra.mxu1 %v2513_v16 }
  0x57   :  { %625 = vmatprep.subr.mxu0 %v2525_v26  ;;  %696 = vmatprep.subr.mxu1 %v3622_v6  ;;  %v43_v6 = vlaneseq }
  0x58   :  { %626 = vmatpush1.msra.mxu0 %v2537_v44  ;;  %697 = vmatpush1.msra.mxu1 %v2542_v53 }
  0x59   :  { %627 = vmatprep.subr.mxu0 %v2549_v62  ;;  %698 = vmatprep.subr.mxu1 %v2554_v8  ;;  %v44_v44 = vshrl.u32 %v43_v6, 7 }
  0x5a   :  { %628 = vmatpush1.msra.mxu0 %v2561_v3  ;;  %661 = vmatprep.mubr.f32.mxu0 %v3621_v35  ;;  %v41_v3 = vld [vmem:[%s3509_s3] sm:$0xf] }
  0x5b   :  { %699 = vmatpush1.msra.mxu1 %v2568_v17  ;;  %732 = vmatprep.mubr.f32.mxu1 %v3621_v35  ;;  %v45_v62 = vsub.s32 0, %v44_v44  ;;  %v53_v8 = vsub.s32 2, %v44_v44  ;;  %v49_v35 = vsub.s32 1, %v44_v44 }
  0x5c   :  { %772 = vmatprep.subr.mxu0 %v2142_v18  ;;  %843 = vmatprep.subr.mxu1 %v2147_v19  ;;  %v57_v18 = vsub.s32 3, %v44_v44 }
  0x5d   :  { %v46_v15 = vrot.slane %v41_v3, %v45_v62  ;;  %v2657_v19 = vrot.slane %v41_v3, %v53_v8  ;;  %v50_v13 = vrot.slane %v41_v3, %v49_v35 }
  0x5e   :  { %v2659_v12 = vrot.slane %v41_v3, %v57_v18 }
  0xca   :  { %v2646_v26 = vpop.f32.mrf.mxu0  ;;  %v2648_v53 = vpop.f32.mrf.mxu1 }
  0xcc   :  { %v2653_v16 = vpop.f32.mrf.mxu0  ;;  %v2655_v17 = vpop.f32.mrf.mxu1 }
  0xd0   :  { %v160_v6 = vpop.f32.mrf.mxu0  ;;  %v273_v14 = vpop.f32.mrf.mxu1 }
  0xd1   :  { %v2661_v11 = vadd.f32 %v160_v6, %v46_v15  ;;  %v2664_v10 = vadd.f32 %v273_v14, %v2657_v19 }
  0xd2   :  { %v162_v9 = vpop.f32.mrf.mxu0  ;;  %v275_v7 = vpop.f32.mrf.mxu1 }
  0xd3   :  { %3623 = vst [vmem:[#allocation27_spill] sm:$0xff] %v2661_v11  ;;  %3624 = vst [vmem:[#allocation28_spill] sm:$0xff] %v2664_v10  ;;  %v2666_v5 = vadd.f32 %v162_v9, %v50_v13  ;;  %v2669_v4 = vadd.f32 %v275_v7, %v2659_v12 }
  0xd5   :  { %3625 = vst [vmem:[#allocation29_spill] sm:$0xff] %v2666_v5  ;;  %3626 = vst [vmem:[#allocation30_spill] sm:$0xff] %v2669_v4 }
  0xd6   :  { %v166_v44 = vpop.f32.mrf.mxu0  ;;  %v279_v62 = vpop.f32.mrf.mxu1 }
  0xd7   :  { %v2671_v8 = vadd.f32 %v166_v44, %v46_v15  ;;  %v2674_v35 = vadd.f32 %v279_v62, %v2657_v19 }
  0xd8   :  { %v168_v3 = vpop.f32.mrf.mxu0  ;;  %v281_v18 = vpop.f32.mrf.mxu1 }
  0xd9   :  { %3627 = vst [vmem:[#allocation31_spill] sm:$0xff] %v2671_v8  ;;  %3628 = vst [vmem:[#allocation32_spill] sm:$0xff] %v2674_v35  ;;  %v2676_v6 = vadd.f32 %v168_v3, %v50_v13  ;;  %v2679_v14 = vadd.f32 %v281_v18, %v2659_v12 }
  0xdb   :  { %3629 = vst [vmem:[#allocation33_spill] sm:$0xff] %v2676_v6  ;;  %3630 = vst [vmem:[#allocation34_spill] sm:$0xff] %v2679_v14 }
  0xdc   :  { %v172_v10 = vpop.f32.mrf.mxu0  ;;  %v285_v9 = vpop.f32.mrf.mxu1 }
  0xdd   :  { %v2681_v5 = vadd.f32 %v172_v10, %v46_v15  ;;  %v2684_v7 = vadd.f32 %v285_v9, %v2657_v19 }
  0xde   :  { %v174_v4 = vpop.f32.mrf.mxu0  ;;  %v287_v44 = vpop.f32.mrf.mxu1 }
  0xdf   :  { %3631 = vst [vmem:[#allocation35_spill] sm:$0xff] %v2681_v5  ;;  %3632 = vst [vmem:[#allocation36_spill] sm:$0xff] %v2684_v7  ;;  %v2686_v8 = vadd.f32 %v174_v4, %v50_v13  ;;  %v2689_v62 = vadd.f32 %v287_v44, %v2659_v12 }
  0xe1   :  { %3633 = vst [vmem:[#allocation37_spill] sm:$0xff] %v2686_v8  ;;  %3634 = vst [vmem:[#allocation38_spill] sm:$0xff] %v2689_v62 }
  0xe2   :  { %v178_v35 = vpop.f32.mrf.mxu0  ;;  %v291_v3 = vpop.f32.mrf.mxu1 }
  0xe3   :  { %v2691_v6 = vadd.f32 %v178_v35, %v46_v15  ;;  %v2694_v18 = vadd.f32 %v291_v3, %v2657_v19 }
  0xe4   :  { %v180_v14 = vpop.f32.mrf.mxu0  ;;  %v293_v10 = vpop.f32.mrf.mxu1 }
  0xe5   :  { %3635 = vst [vmem:[#allocation39_spill] sm:$0xff] %v2691_v6  ;;  %3636 = vst [vmem:[#allocation40_spill] sm:$0xff] %v2694_v18  ;;  %v2696_v5 = vadd.f32 %v180_v14, %v50_v13  ;;  %v2699_v9 = vadd.f32 %v293_v10, %v2659_v12 }
  0xe7   :  { %3637 = vst [vmem:[#allocation41_spill] sm:$0xff] %v2696_v5  ;;  %3638 = vst [vmem:[#allocation42_spill] sm:$0xff] %v2699_v9 }
  0xe8   :  { %v184_v7 = vpop.f32.mrf.mxu0  ;;  %v297_v4 = vpop.f32.mrf.mxu1 }
  0xe9   :  { %v2701_v8 = vadd.f32 %v184_v7, %v46_v15  ;;  %v2704_v44 = vadd.f32 %v297_v4, %v2657_v19 }
  0xea   :  { %v186_v62 = vpop.f32.mrf.mxu0  ;;  %v299_v35 = vpop.f32.mrf.mxu1 }
  0xeb   :  { %3639 = vst [vmem:[#allocation43_spill] sm:$0xff] %v2701_v8  ;;  %3640 = vst [vmem:[#allocation44_spill] sm:$0xff] %v2704_v44  ;;  %v2706_v6 = vadd.f32 %v186_v62, %v50_v13  ;;  %v2709_v3 = vadd.f32 %v299_v35, %v2659_v12 }
  0xed   :  { %3641 = vst [vmem:[#allocation45_spill] sm:$0xff] %v2706_v6  ;;  %3642 = vst [vmem:[#allocation46_spill] sm:$0xff] %v2709_v3 }
  0xee   :  { %v190_v18 = vpop.f32.mrf.mxu0  ;;  %v303_v14 = vpop.f32.mrf.mxu1 }
  0xef   :  { %v2711_v5 = vadd.f32 %v190_v18, %v46_v15  ;;  %v2714_v10 = vadd.f32 %v303_v14, %v2657_v19 }
  0xf0   :  { %v192_v9 = vpop.f32.mrf.mxu0  ;;  %v305_v7 = vpop.f32.mrf.mxu1 }
  0xf1   :  { %3643 = vst [vmem:[#allocation47_spill] sm:$0xff] %v2711_v5  ;;  %3644 = vst [vmem:[#allocation48_spill] sm:$0xff] %v2714_v10  ;;  %v2716_v8 = vadd.f32 %v192_v9, %v50_v13  ;;  %v2719_v4 = vadd.f32 %v305_v7, %v2659_v12  ;;  %v155_v9 = vadd.f32 %v2646_v26, %v46_v15 }
  0xf2   :  { %v157_v7 = vadd.f32 %v2653_v16, %v50_v13 }
  0xf3   :  { %3645 = vst [vmem:[#allocation49_spill] sm:$0xff] %v2716_v8  ;;  %3646 = vst [vmem:[#allocation50_spill] sm:$0xff] %v2719_v4 }
  0xf4   :  { %v196_v44 = vpop.f32.mrf.mxu0  ;;  %v309_v62 = vpop.f32.mrf.mxu1 }
  0xf5   :  { %v2721_v6 = vadd.f32 %v196_v44, %v46_v15  ;;  %v2724_v35 = vadd.f32 %v309_v62, %v2657_v19 }
  0xf6   :  { %v198_v3 = vpop.f32.mrf.mxu0  ;;  %v311_v18 = vpop.f32.mrf.mxu1 }
  0xf7   :  { %3647 = vst [vmem:[#allocation51_spill] sm:$0xff] %v2721_v6  ;;  %3648 = vst [vmem:[#allocation52_spill] sm:$0xff] %v2724_v35  ;;  %v2726_v5 = vadd.f32 %v198_v3, %v50_v13  ;;  %v2729_v14 = vadd.f32 %v311_v18, %v2659_v12  ;;  %v268_v3 = vadd.f32 %v2648_v53, %v2657_v19 }
  0xf8   :  { %v270_v18 = vadd.f32 %v2655_v17, %v2659_v12 }
  0xf9   :  { %3649 = vst [vmem:[#allocation53_spill] sm:$0xff] %v2726_v5  ;;  %3650 = vst [vmem:[#allocation54_spill] sm:$0xff] %v2729_v14 }
  0xfa   :  { %v488_v10 = vpop.f32.mrf.mxu0  ;;  %v559_v62 = vpop.f32.mrf.mxu1 }
  0xfb   :  { %v564_v4 = vadd.f32 %v488_v10, %v155_v9  ;;  %v566_v35 = vadd.f32 %v559_v62, %v268_v3  ;;  %v3654_v62 = vld [vmem:[#allocation10_spill] sm:$0xff]  ;;  %v3655_v3 = vld [vmem:[#allocation11_spill] sm:$0xff] }
  0xfc   :  { %v490_v8 = vpop.f32.mrf.mxu0  ;;  %v561_v5 = vpop.f32.mrf.mxu1 }
  0xfd   :  { %v1843_v11 = vmul.f32 -1.442695, %v564_v4  ;;  %v565_v44 = vadd.f32 %v490_v8, %v157_v7  ;;  %v1845_v15 = vmul.f32 -1.442695, %v566_v35  ;;  %v567_v14 = vadd.f32 %v561_v5, %v270_v18  ;;  %v3651_v35 = vld [vmem:[#allocation7_spill] sm:$0xff]  ;;  %v3656_v18 = vld [vmem:[#allocation12_spill] sm:$0xff] }
  0xff   :  { %1868 = vpow2.f32 %v1843_v11  ;;  %v1844_v6 = vmul.f32 -1.442695, %v565_v44  ;;  %v3653_v44 = vld [vmem:[#allocation9_spill] sm:$0xff] }
 0x101   :  { %1870 = vpow2.f32 %v1844_v6 }
 0x102   :  { %1872 = vpow2.f32 %v1845_v15  ;;  %v3657_v15 = vld [vmem:[#allocation13_spill] sm:$0xff] }
 0x10c   :  { %v1869_v26 = vpop.eup %1868 }
 0x10d   :  { %v577_v13 = vadd.f32 1.0, %v1869_v26  ;;  %v3658_v26 = vld [vmem:[#allocation14_spill] sm:$0xff] }
 0x10e   :  { %v1871_v16 = vpop.eup %1870 }
 0x10f   :  { %1874 = vrcp.f32 %v577_v13  ;;  %v578_v8 = vadd.f32 1.0, %v1871_v16  ;;  %v1873_v11 = vpop.eup %1872  ;;  %v3659_v13 = vld [vmem:[#allocation15_spill] sm:$0xff]  ;;  %v3660_v16 = vld [vmem:[#allocation16_spill] sm:$0xff] }
 0x110   :  { %1876 = vtanh.f32 %v567_v14  ;;  %v579_v19 = vadd.f32 1.0, %v1873_v11  ;;  %v3652_v14 = vld [vmem:[#allocation8_spill] sm:$0xff]  ;;  %v3662_v11 = vld [vmem:[#allocation18_spill] sm:$0xff] }
 0x111   :  { %1878 = vrcp.f32 %v578_v8  ;;  %v3661_v8 = vld [vmem:[#allocation17_spill] sm:$0xff] }
 0x112   :  { %1880 = vrcp.f32 %v579_v19  ;;  %v3666_v19 = vld [vmem:[#allocation22_spill] sm:$0xff] }
 0x11c   :  { %v1875_v6 = vpop.eup %1874 }
 0x11d   :  { %v1877_v10 = vpop.eup %1876 }
 0x11e   :  { %v1879_v4 = vpop.eup %1878  ;;  %v588_v9 = vmul.f32 %v1877_v10, %v1875_v6  ;;  %v3663_v6 = vld [vmem:[#allocation19_spill] sm:$0xff]  ;;  %v3664_v10 = vld [vmem:[#allocation20_spill] sm:$0xff] }
 0x11f   :  { %v587_v53 = vmul.f32 0.0, %v1879_v4  ;;  %v1881_v5 = vpop.eup %1880  ;;  %v3665_v4 = vld [vmem:[#allocation21_spill] sm:$0xff] }
 0x121   :  { %v2737_v7 = vadd.f32 %v588_v9, %v587_v53  ;;  %v3667_v53 = vld [vmem:[#allocation23_spill] sm:$0xff]  ;;  %v3668_v9 = vld [vmem:[#allocation24_spill] sm:$0xff] }
 0x123   :  { %1882 = vtanh.f32 %v2737_v7 }
 0x130   :  { %v1883_v12 = vpop.eup %1882 }
 0x131   :  { %v591_v17 = vmul.f32 %v1883_v12, %v1881_v5  ;;  %v3669_v5 = vld [vmem:[#allocation25_spill] sm:$0xff]  ;;  %v3670_v12 = vmov 0.0  }
 0x133   :  { %662 = vmatmul.mubr.f32.vlgmr.msra.gmra.mxu0 %v591_v17  ;;  %733 = vmatmul.mubr.f32.vlgmr.msra.gmra.mxu1 %v591_v17  ;;  %v3671_v17 = vld [vmem:[#allocation26_spill] sm:$0xff] }
 0x134   :  { %773 = vmatpush1.msra.mxu0 %v2152_v20  ;;  %844 = vmatpush1.msra.mxu1 %v2157_v21 }
 0x135   :  { %774 = vmatprep.subr.mxu0 %v2164_v22  ;;  %845 = vmatprep.subr.mxu1 %v2169_v23 }
 0x136   :  { %775 = vmatpush1.msra.mxu0 %v2178_v24  ;;  %846 = vmatpush1.msra.mxu1 %v2183_v25 }
 0x137   :  { %776 = vmatprep.subr.mxu0 %v2195_v27  ;;  %847 = vmatprep.subr.mxu1 %v2200_v28 }
 0x138   :  { %777 = vmatpush1.msra.mxu0 %v2207_v29  ;;  %848 = vmatpush1.msra.mxu1 %v2212_v30 }
 0x139   :  { %778 = vmatprep.subr.mxu0 %v2219_v31  ;;  %849 = vmatprep.subr.mxu1 %v2224_v32 }
 0x13a   :  { %779 = vmatpush1.msra.mxu0 %v2233_v33  ;;  %850 = vmatpush1.msra.mxu1 %v2238_v34 }
 0x13b   :  { %780 = vmatprep.subr.mxu0 %v2250_v36  ;;  %851 = vmatprep.subr.mxu1 %v2255_v37 }
 0x13c   :  { %781 = vmatpush1.msra.mxu0 %v2262_v38  ;;  %852 = vmatpush1.msra.mxu1 %v2267_v39 }
 0x13d   :  { %782 = vmatprep.subr.mxu0 %v2274_v40  ;;  %853 = vmatprep.subr.mxu1 %v2279_v41 }
 0x13e   :  { %783 = vmatpush1.msra.mxu0 %v2288_v42  ;;  %854 = vmatpush1.msra.mxu1 %v2293_v43 }
 0x13f   :  { %784 = vmatprep.subr.mxu0 %v2305_v45  ;;  %855 = vmatprep.subr.mxu1 %v2310_v46 }
 0x140   :  { %785 = vmatpush1.msra.mxu0 %v2317_v47  ;;  %856 = vmatpush1.msra.mxu1 %v2322_v48 }
 0x141   :  { %786 = vmatprep.subr.mxu0 %v2329_v49  ;;  %857 = vmatprep.subr.mxu1 %v2334_v50 }
 0x142   :  { %787 = vmatpush1.msra.mxu0 %v2343_v51  ;;  %858 = vmatpush1.msra.mxu1 %v2348_v52 }
 0x143   :  { %788 = vmatprep.subr.mxu0 %v2360_v54  ;;  %859 = vmatprep.subr.mxu1 %v2365_v55 }
 0x144   :  { %789 = vmatpush1.msra.mxu0 %v2372_v56  ;;  %860 = vmatpush1.msra.mxu1 %v2377_v57 }
 0x145   :  { %790 = vmatprep.subr.mxu0 %v2384_v58  ;;  %861 = vmatprep.subr.mxu1 %v2389_v59 }
 0x146   :  { %791 = vmatpush1.msra.mxu0 %v2398_v60  ;;  %862 = vmatpush1.msra.mxu1 %v2403_v61 }
 0x147   :  { %792 = vmatprep.subr.mxu0 %v2415_v63  ;;  %863 = vmatprep.subr.mxu1 %v2420_v0 }
 0x148   :  { %793 = vmatpush1.msra.mxu0 %v2427_v1  ;;  %864 = vmatpush1.msra.mxu1 %v2432_v2 }
 0x149   :  { %794 = vmatprep.subr.mxu0 %v3651_v35  ;;  %865 = vmatprep.subr.mxu1 %v3652_v14 }
 0x14a   :  { %795 = vmatpush1.msra.mxu0 %v3653_v44  ;;  %866 = vmatpush1.msra.mxu1 %v3654_v62 }
 0x14b   :  { %796 = vmatprep.subr.mxu0 %v3655_v3  ;;  %867 = vmatprep.subr.mxu1 %v3656_v18 }
 0x14c   :  { %797 = vmatpush1.msra.mxu0 %v3657_v15  ;;  %868 = vmatpush1.msra.mxu1 %v3658_v26  ;;  %v3676_v26 = vld [vmem:[#allocation28_spill] sm:$0xff] }
 0x14d   :  { %798 = vmatprep.subr.mxu0 %v3659_v13  ;;  %869 = vmatprep.subr.mxu1 %v3660_v16 }
 0x14e   :  { %799 = vmatpush1.msra.mxu0 %v3661_v8  ;;  %870 = vmatpush1.msra.mxu1 %v3662_v11  ;;  %v3672_v11 = vld [vmem:[#allocation5_spill] sm:$0xff] }
 0x14f   :  { %800 = vmatprep.subr.mxu0 %v3663_v6  ;;  %871 = vmatprep.subr.mxu1 %v3664_v10  ;;  %v3673_v6 = vld [vmem:[#allocation6_spill] sm:$0xff] }
 0x150   :  { %801 = vmatpush1.msra.mxu0 %v3665_v4  ;;  %872 = vmatpush1.msra.mxu1 %v3666_v19  ;;  %v3674_v4 = vld [vmem:[#allocation27_spill] sm:$0xff] }
 0x151   :  { %802 = vmatprep.subr.mxu0 %v3667_v53  ;;  %873 = vmatprep.subr.mxu1 %v3668_v9  ;;  %v3675_v53 = vld [vmem:[#allocation29_spill] sm:$0xff] }
 0x152   :  { %803 = vmatpush1.msra.mxu0 %v3669_v5  ;;  %836 = vmatprep.mubr.f32.mxu0 %v3670_v12 }
 0x153   :  { %874 = vmatpush1.msra.mxu1 %v3671_v17  ;;  %907 = vmatprep.mubr.f32.mxu1 %v3670_v12  ;;  %v3677_v12 = vld [vmem:[#allocation30_spill] sm:$0xff] }
 0x154   :  { %947 = vmatprep.subr.mxu0 %v3672_v11  ;;  %1018 = vmatprep.subr.mxu1 %v3673_v6 }
 0x1f3   :  { %v663_v10 = vpop.f32.mrf.mxu0  ;;  %v734_v5 = vpop.f32.mrf.mxu1 }
 0x1f4   :  { %v739_v8 = vadd.f32 %v663_v10, %v3674_v4  ;;  %v741_v15 = vadd.f32 %v734_v5, %v3676_v26 }
 0x1f5   :  { %v665_v19 = vpop.f32.mrf.mxu0  ;;  %v736_v17 = vpop.f32.mrf.mxu1 }
 0x1f6   :  { %v1846_v16 = vmul.f32 -1.442695, %v739_v8  ;;  %v740_v13 = vadd.f32 %v665_v19, %v3675_v53  ;;  %v1848_v18 = vmul.f32 -1.442695, %v741_v15  ;;  %v742_v3 = vadd.f32 %v736_v17, %v3677_v12  ;;  %v3700_v12 = vld [vmem:[#allocation32_spill] sm:$0xff] }
 0x1f8   :  { %1884 = vpow2.f32 %v1846_v16  ;;  %v1847_v9 = vmul.f32 -1.442695, %v740_v13 }
 0x1fa   :  { %1886 = vpow2.f32 %v1847_v9 }
 0x1fb   :  { %1888 = vpow2.f32 %v1848_v18 }
 0x1fc   :  { %1890 = vtanh.f32 %v742_v3 }
 0x205   :  { %v1885_v11 = vpop.eup %1884 }
 0x206   :  { %v752_v62 = vadd.f32 1.0, %v1885_v11 }
 0x207   :  { %v1887_v6 = vpop.eup %1886 }
 0x208   :  { %1892 = vrcp.f32 %v752_v62  ;;  %v753_v10 = vadd.f32 1.0, %v1887_v6  ;;  %v1889_v8 = vpop.eup %1888 }
 0x209   :  { %v1891_v4 = vpop.eup %1890  ;;  %v754_v53 = vadd.f32 1.0, %v1889_v8 }
 0x20a   :  { %1894 = vrcp.f32 %v753_v10  ;;  %v3701_v10 = vld [vmem:[#allocation34_spill] sm:$0xff] }
 0x20b   :  { %1896 = vrcp.f32 %v754_v53 }
 0x215   :  { %v1893_v16 = vpop.eup %1892 }
 0x216   :  { %v763_v13 = vmul.f32 %v1893_v16, %v1891_v4 }
 0x217   :  { %v1895_v19 = vpop.eup %1894 }
 0x218   :  { %v762_v26 = vmul.f32 %v1895_v19, %v2737_v7  ;;  %v1897_v15 = vpop.eup %1896 }
 0x21a   :  { %v2811_v9 = vadd.f32 %v763_v13, %v762_v26 }
 0x21c   :  { %1898 = vtanh.f32 %v2811_v9 }
 0x229   :  { %v1899_v18 = vpop.eup %1898 }
 0x22a   :  { %v766_v5 = vmul.f32 %v1899_v18, %v1897_v15 }
 0x22c   :  { %837 = vmatmul.mubr.f32.vlgmr.msra.gmra.mxu0 %v766_v5  ;;  %908 = vmatmul.mubr.f32.vlgmr.msra.gmra.mxu1 %v766_v5 }
 0x22d   :  { %948 = vmatpush1.msra.mxu0 %v2152_v20  ;;  %1019 = vmatpush1.msra.mxu1 %v2157_v21  ;;  %v3678_v20 = vld [vmem:[#allocation10_spill] sm:$0xff]  ;;  %v3679_v21 = vld [vmem:[#allocation11_spill] sm:$0xff] }
 0x22e   :  { %949 = vmatprep.subr.mxu0 %v2164_v22  ;;  %1020 = vmatprep.subr.mxu1 %v2169_v23  ;;  %v3680_v22 = vld [vmem:[#allocation12_spill] sm:$0xff]  ;;  %v3681_v23 = vld [vmem:[#allocation13_spill] sm:$0xff] }
 0x22f   :  { %950 = vmatpush1.msra.mxu0 %v2178_v24  ;;  %1021 = vmatpush1.msra.mxu1 %v2183_v25  ;;  %v3682_v24 = vld [vmem:[#allocation14_spill] sm:$0xff]  ;;  %v3683_v25 = vld [vmem:[#allocation15_spill] sm:$0xff] }
 0x230   :  { %951 = vmatprep.subr.mxu0 %v2195_v27  ;;  %1022 = vmatprep.subr.mxu1 %v2200_v28  ;;  %v3684_v27 = vld [vmem:[#allocation16_spill] sm:$0xff]  ;;  %v3685_v28 = vld [vmem:[#allocation17_spill] sm:$0xff] }
 0x231   :  { %952 = vmatpush1.msra.mxu0 %v2207_v29  ;;  %1023 = vmatpush1.msra.mxu1 %v2212_v30  ;;  %v3686_v29 = vld [vmem:[#allocation18_spill] sm:$0xff]  ;;  %v3687_v30 = vld [vmem:[#allocation19_spill] sm:$0xff] }
 0x232   :  { %953 = vmatprep.subr.mxu0 %v2219_v31  ;;  %1024 = vmatprep.subr.mxu1 %v2224_v32  ;;  %v3688_v31 = vld [vmem:[#allocation20_spill] sm:$0xff]  ;;  %v3689_v32 = vld [vmem:[#allocation21_spill] sm:$0xff] }
 0x233   :  { %954 = vmatpush1.msra.mxu0 %v2233_v33  ;;  %1025 = vmatpush1.msra.mxu1 %v2238_v34  ;;  %v3690_v33 = vld [vmem:[#allocation22_spill] sm:$0xff]  ;;  %v3691_v34 = vld [vmem:[#allocation23_spill] sm:$0xff] }
 0x234   :  { %955 = vmatprep.subr.mxu0 %v2250_v36  ;;  %1026 = vmatprep.subr.mxu1 %v2255_v37  ;;  %v3692_v36 = vld [vmem:[#allocation24_spill] sm:$0xff]  ;;  %v3693_v37 = vld [vmem:[#allocation25_spill] sm:$0xff] }
 0x235   :  { %956 = vmatpush1.msra.mxu0 %v2262_v38  ;;  %1027 = vmatpush1.msra.mxu1 %v2267_v39  ;;  %v3694_v38 = vmov 0.0   ;;  %v3695_v39 = vld [vmem:[#allocation26_spill] sm:$0xff] }
 0x236   :  { %957 = vmatprep.subr.mxu0 %v2274_v40  ;;  %1028 = vmatprep.subr.mxu1 %v2279_v41  ;;  %v2881_v40 = vld [vmem:[%s3508_s2 + $0x1e8] sm:$0xff]  ;;  %v2887_v41 = vld [vmem:[%s3508_s2 + $0x1f8] sm:$0xff] }
 0x237   :  { %958 = vmatpush1.msra.mxu0 %v2288_v42  ;;  %1029 = vmatpush1.msra.mxu1 %v2293_v43  ;;  %3696 = vst [vmem:[#allocation7_spill] sm:$0xff] %v2881_v40  ;;  %3697 = vst [vmem:[#allocation8_spill] sm:$0xff] %v2887_v41  ;;  %v3698_v43 = vld [vmem:[#allocation31_spill] sm:$0xff] }
 0x238   :  { %959 = vmatprep.subr.mxu0 %v2305_v45  ;;  %1030 = vmatprep.subr.mxu1 %v2310_v46 }
 0x239   :  { %960 = vmatpush1.msra.mxu0 %v2317_v47  ;;  %1031 = vmatpush1.msra.mxu1 %v2322_v48  ;;  %v3699_v48 = vld [vmem:[#allocation33_spill] sm:$0xff] }
 0x23a   :  { %961 = vmatprep.subr.mxu0 %v2329_v49  ;;  %1032 = vmatprep.subr.mxu1 %v2334_v50 }
 0x23b   :  { %962 = vmatpush1.msra.mxu0 %v2343_v51  ;;  %1033 = vmatpush1.msra.mxu1 %v2348_v52 }
 0x23c   :  { %963 = vmatprep.subr.mxu0 %v2360_v54  ;;  %1034 = vmatprep.subr.mxu1 %v2365_v55 }
 0x23d   :  { %964 = vmatpush1.msra.mxu0 %v2372_v56  ;;  %1035 = vmatpush1.msra.mxu1 %v2377_v57 }
 0x23e   :  { %965 = vmatprep.subr.mxu0 %v2384_v58  ;;  %1036 = vmatprep.subr.mxu1 %v2389_v59 }
 0x23f   :  { %966 = vmatpush1.msra.mxu0 %v2398_v60  ;;  %1037 = vmatpush1.msra.mxu1 %v2403_v61 }
 0x240   :  { %967 = vmatprep.subr.mxu0 %v2415_v63  ;;  %1038 = vmatprep.subr.mxu1 %v2420_v0 }
 0x241   :  { %968 = vmatpush1.msra.mxu0 %v2427_v1  ;;  %1039 = vmatpush1.msra.mxu1 %v2432_v2 }
 0x242   :  { %969 = vmatprep.subr.mxu0 %v3651_v35  ;;  %1040 = vmatprep.subr.mxu1 %v3652_v14 }
 0x243   :  { %970 = vmatpush1.msra.mxu0 %v3653_v44  ;;  %1041 = vmatpush1.msra.mxu1 %v3678_v20 }
 0x244   :  { %971 = vmatprep.subr.mxu0 %v3679_v21  ;;  %1042 = vmatprep.subr.mxu1 %v3680_v22 }
 0x245   :  { %972 = vmatpush1.msra.mxu0 %v3681_v23  ;;  %1043 = vmatpush1.msra.mxu1 %v3682_v24 }
 0x246   :  { %973 = vmatprep.subr.mxu0 %v3683_v25  ;;  %1044 = vmatprep.subr.mxu1 %v3684_v27 }
 0x247   :  { %974 = vmatpush1.msra.mxu0 %v3685_v28  ;;  %1045 = vmatpush1.msra.mxu1 %v3686_v29 }
 0x248   :  { %975 = vmatprep.subr.mxu0 %v3687_v30  ;;  %1046 = vmatprep.subr.mxu1 %v3688_v31 }
 0x249   :  { %976 = vmatpush1.msra.mxu0 %v3689_v32  ;;  %1047 = vmatpush1.msra.mxu1 %v3690_v33 }
 0x24a   :  { %977 = vmatprep.subr.mxu0 %v3691_v34  ;;  %1048 = vmatprep.subr.mxu1 %v3692_v36 }
 0x24b   :  { %978 = vmatpush1.msra.mxu0 %v3693_v37  ;;  %1011 = vmatprep.mubr.f32.mxu0 %v3694_v38 }
 0x24c   :  { %1049 = vmatpush1.msra.mxu1 %v3695_v39  ;;  %1082 = vmatprep.mubr.f32.mxu1 %v3694_v38 }
 0x24d   :  { %1122 = vmatprep.subr.mxu0 %v2881_v40  ;;  %1193 = vmatprep.subr.mxu1 %v2887_v41 }
 0x2ec   :  { %v838_v42 = vpop.f32.mrf.mxu0  ;;  %v909_v3 = vpop.f32.mrf.mxu1 }
 0x2ed   :  { %v914_v45 = vadd.f32 %v838_v42, %v3698_v43  ;;  %v916_v17 = vadd.f32 %v909_v3, %v3700_v12  ;;  %v2919_v3 = vld [vmem:[%s3508_s2 + $0x1d8] sm:$0xff]  ;;  %v2925_v12 = vld [vmem:[%s3508_s2 + $0x1c0] sm:$0xff] }
 0x2ee   :  { %v840_v46 = vpop.f32.mrf.mxu0  ;;  %v911_v11 = vpop.f32.mrf.mxu1 }
 0x2ef   :  { %v1849_v47 = vmul.f32 -1.442695, %v914_v45  ;;  %v915_v7 = vadd.f32 %v840_v46, %v3699_v48  ;;  %v1851_v6 = vmul.f32 -1.442695, %v916_v17  ;;  %v917_v8 = vadd.f32 %v911_v11, %v3701_v10  ;;  %v2931_v17 = vld [vmem:[%s3508_s2 + $0x1d0] sm:$0xff]  ;;  %v2937_v11 = vld [vmem:[%s3508_s2 + $0x1a8] sm:$0xff] }
 0x2f0   :  { %v2949_v10 = vld [vmem:[%s3508_s2 + $0x1a0] sm:$0xff] }
 0x2f1   :  { %1900 = vpow2.f32 %v1849_v47  ;;  %v1850_v62 = vmul.f32 -1.442695, %v915_v7  ;;  %v2901_v7 = vld [vmem:[%s3508_s2 + $0x1e0] sm:$0xff] }
 0x2f3   :  { %1902 = vpow2.f32 %v1850_v62  ;;  %v2913_v62 = vld [vmem:[%s3508_s2 + $0x1c8] sm:$0xff] }
 0x2f4   :  { %1904 = vpow2.f32 %v1851_v6  ;;  %v2943_v6 = vld [vmem:[%s3508_s2 + $0x1b8] sm:$0xff] }
 0x2f5   :  { %1906 = vtanh.f32 %v917_v8  ;;  %v2955_v8 = vld [vmem:[%s3508_s2 + $0x1b0] sm:$0xff] }
 0x2fe   :  { %v1901_v4 = vpop.eup %1900 }
 0x2ff   :  { %v927_v16 = vadd.f32 1.0, %v1901_v4  ;;  %v2961_v4 = vld [vmem:[%s3508_s2 + $0x188] sm:$0xff] }
 0x300   :  { %v1903_v13 = vpop.eup %1902 }
 0x301   :  { %1908 = vrcp.f32 %v927_v16  ;;  %v928_v19 = vadd.f32 1.0, %v1903_v13  ;;  %v1905_v53 = vpop.eup %1904  ;;  %v2967_v16 = vld [vmem:[%s3508_s2 + $0x198] sm:$0xff]  ;;  %v2973_v13 = vld [vmem:[%s3508_s2 + $0x180] sm:$0xff] }
 0x302   :  { %v1907_v26 = vpop.eup %1906  ;;  %v929_v42 = vadd.f32 1.0, %v1905_v53  ;;  %v2985_v53 = vld [vmem:[%s3508_s2 + $0x168] sm:$0xff] }
 0x303   :  { %1910 = vrcp.f32 %v928_v19  ;;  %v2979_v19 = vld [vmem:[%s3508_s2 + $0x190] sm:$0xff] }
 0x304   :  { %1912 = vrcp.f32 %v929_v42  ;;  %v3015_v42 = vld [vmem:[%s3508_s2 + $0x158] sm:$0xff] }
 0x30e   :  { %v1909_v15 = vpop.eup %1908 }
 0x30f   :  { %v938_v18 = vmul.f32 %v1909_v15, %v1907_v26  ;;  %v2991_v26 = vld [vmem:[%s3508_s2 + $0x178] sm:$0xff]  ;;  %v2997_v15 = vld [vmem:[%s3508_s2 + $0x160] sm:$0xff] }
 0x310   :  { %v1911_v5 = vpop.eup %1910 }
 0x311   :  { %v937_v43 = vmul.f32 %v1911_v5, %v2811_v9  ;;  %v1913_v46 = vpop.eup %1912  ;;  %v2907_v9 = vld [vmem:[%s3508_s2 + $0x1f0] sm:$0xff]  ;;  %v3009_v5 = vld [vmem:[%s3508_s2 + $0x148] sm:$0xff] }
 0x313   :  { %v2895_v45 = vadd.f32 %v938_v18, %v937_v43  ;;  %v3003_v18 = vld [vmem:[%s3508_s2 + $0x170] sm:$0xff]  ;;  %v3021_v43 = vld [vmem:[%s3508_s2 + $0x140] sm:$0xff] }
 0x314   :  { %3702 = vst [vmem:[#allocation9_spill] sm:$0xff] %v3021_v43 }
 0x315   :  { %1914 = vtanh.f32 %v2895_v45 }
 0x322   :  { %v1915_v47 = vpop.eup %1914 }
 0x323   :  { %v941_v48 = vmul.f32 %v1915_v47, %v1913_v46  ;;  %v3027_v46 = vld [vmem:[%s3508_s2 + $0x150] sm:$0xff]  ;;  %v3033_v47 = vld [vmem:[%s3508_s2 + $0x128] sm:$0xff] }
 0x324   :  { %3703 = vst [vmem:[#allocation5_spill] sm:$0xff] %v3027_v46 }
 0x325   :  { %1012 = vmatmul.mubr.f32.vlgmr.msra.gmra.mxu0 %v941_v48  ;;  %1083 = vmatmul.mubr.f32.vlgmr.msra.gmra.mxu1 %v941_v48  ;;  %v3039_v48 = vld [vmem:[%s3508_s2 + $0x138] sm:$0xff] }
 0x326   :  { %1123 = vmatpush1.msra.mxu0 %v2901_v7  ;;  %1194 = vmatpush1.msra.mxu1 %v2907_v9 }
 0x327   :  { %1124 = vmatprep.subr.mxu0 %v2913_v62  ;;  %1195 = vmatprep.subr.mxu1 %v2919_v3 }
 0x328   :  { %1125 = vmatpush1.msra.mxu0 %v2925_v12  ;;  %1196 = vmatpush1.msra.mxu1 %v2931_v17 }
 0x329   :  { %1126 = vmatprep.subr.mxu0 %v2937_v11  ;;  %1197 = vmatprep.subr.mxu1 %v2943_v6 }
 0x32a   :  { %1127 = vmatpush1.msra.mxu0 %v2949_v10  ;;  %1198 = vmatpush1.msra.mxu1 %v2955_v8 }
 0x32b   :  { %1128 = vmatprep.subr.mxu0 %v2961_v4  ;;  %1199 = vmatprep.subr.mxu1 %v2967_v16 }
 0x32c   :  { %1129 = vmatpush1.msra.mxu0 %v2973_v13  ;;  %1200 = vmatpush1.msra.mxu1 %v2979_v19 }
 0x32d   :  { %1130 = vmatprep.subr.mxu0 %v2985_v53  ;;  %1201 = vmatprep.subr.mxu1 %v2991_v26 }
 0x32e   :  { %1131 = vmatpush1.msra.mxu0 %v2997_v15  ;;  %1202 = vmatpush1.msra.mxu1 %v3003_v18 }
 0x32f   :  { %1132 = vmatprep.subr.mxu0 %v3009_v5  ;;  %1203 = vmatprep.subr.mxu1 %v3015_v42 }
 0x330   :  { %1133 = vmatpush1.msra.mxu0 %v3021_v43  ;;  %1204 = vmatpush1.msra.mxu1 %v3027_v46  ;;  %v3045_v43 = vld [vmem:[%s3508_s2 + $0x120] sm:$0xff]  ;;  %v3051_v46 = vld [vmem:[%s3508_s2 + $0x130] sm:$0xff] }
 0x331   :  { %1134 = vmatprep.subr.mxu0 %v3033_v47  ;;  %1205 = vmatprep.subr.mxu1 %v3039_v48 }
 0x332   :  { %1135 = vmatpush1.msra.mxu0 %v3045_v43  ;;  %1206 = vmatpush1.msra.mxu1 %v3051_v46 }
 0x333   :  { %1136 = vmatprep.subr.mxu0 %v2329_v49  ;;  %1207 = vmatprep.subr.mxu1 %v2334_v50  ;;  %v3704_v50 = vld [vmem:[#allocation35_spill] sm:$0xff] }
 0x334   :  { %1137 = vmatpush1.msra.mxu0 %v2343_v51  ;;  %1208 = vmatpush1.msra.mxu1 %v2348_v52 }
 0x335   :  { %1138 = vmatprep.subr.mxu0 %v2360_v54  ;;  %1209 = vmatprep.subr.mxu1 %v2365_v55  ;;  %v3705_v55 = vld [vmem:[#allocation37_spill] sm:$0xff] }
 0x336   :  { %1139 = vmatpush1.msra.mxu0 %v2372_v56  ;;  %1210 = vmatpush1.msra.mxu1 %v2377_v57 }
 0x337   :  { %1140 = vmatprep.subr.mxu0 %v2384_v58  ;;  %1211 = vmatprep.subr.mxu1 %v2389_v59  ;;  %v3706_v59 = vld [vmem:[#allocation36_spill] sm:$0xff] }
 0x338   :  { %1141 = vmatpush1.msra.mxu0 %v2398_v60  ;;  %1212 = vmatpush1.msra.mxu1 %v2403_v61 }
 0x339   :  { %1142 = vmatprep.subr.mxu0 %v2415_v63  ;;  %1213 = vmatprep.subr.mxu1 %v2420_v0  ;;  %v3707_v0 = vld [vmem:[#allocation38_spill] sm:$0xff] }
 0x33a   :  { %1143 = vmatpush1.msra.mxu0 %v2427_v1  ;;  %1214 = vmatpush1.msra.mxu1 %v2432_v2 }
 0x33b   :  { %1144 = vmatprep.subr.mxu0 %v3651_v35  ;;  %1215 = vmatprep.subr.mxu1 %v3652_v14 }
 0x33c   :  { %1145 = vmatpush1.msra.mxu0 %v3653_v44  ;;  %1216 = vmatpush1.msra.mxu1 %v3678_v20 }
 0x33d   :  { %1146 = vmatprep.subr.mxu0 %v3679_v21  ;;  %1217 = vmatprep.subr.mxu1 %v3680_v22 }
 0x33e   :  { %1147 = vmatpush1.msra.mxu0 %v3681_v23  ;;  %1218 = vmatpush1.msra.mxu1 %v3682_v24 }
 0x33f   :  { %1148 = vmatprep.subr.mxu0 %v3683_v25  ;;  %1219 = vmatprep.subr.mxu1 %v3684_v27 }
 0x340   :  { %1149 = vmatpush1.msra.mxu0 %v3685_v28  ;;  %1220 = vmatpush1.msra.mxu1 %v3686_v29 }
 0x341   :  { %1150 = vmatprep.subr.mxu0 %v3687_v30  ;;  %1221 = vmatprep.subr.mxu1 %v3688_v31 }
 0x342   :  { %1151 = vmatpush1.msra.mxu0 %v3689_v32  ;;  %1222 = vmatpush1.msra.mxu1 %v3690_v33  ;;  %v3708_v32 = vld [vmem:[#allocation9_spill] sm:$0xff] }
 0x343   :  { %1152 = vmatprep.subr.mxu0 %v3691_v34  ;;  %1223 = vmatprep.subr.mxu1 %v3692_v36  ;;  %v3709_v33 = vld [vmem:[#allocation5_spill] sm:$0xff]  ;;  %v3131_v34 = vld [vmem:[%s3508_s2 + $0x108] sm:$0xff]  ;;  %v3137_v36 = vld [vmem:[%s3508_s2 + $0x118] sm:$0xff] }
 0x344   :  { %1153 = vmatpush1.msra.mxu0 %v3693_v37  ;;  %1186 = vmatprep.mubr.f32.mxu0 %v3694_v38  ;;  %v3143_v37 = vld [vmem:[%s3508_s2 + $0x100] sm:$0xff] }
 0x345   :  { %1224 = vmatpush1.msra.mxu1 %v3695_v39  ;;  %1257 = vmatprep.mubr.f32.mxu1 %v3694_v38  ;;  %v3149_v39 = vld [vmem:[%s3508_s2 + $0x110] sm:$0xff] }
 0x346   :  { %1297 = vmatprep.subr.mxu0 %v2881_v40  ;;  %1368 = vmatprep.subr.mxu1 %v2887_v41 }
 0x3e5   :  { %v1013_v49 = vpop.f32.mrf.mxu0  ;;  %v1084_v58 = vpop.f32.mrf.mxu1 }
 0x3e6   :  { %v1089_v51 = vadd.f32 %v1013_v49, %v3704_v50  ;;  %v1091_v60 = vadd.f32 %v1084_v58, %v3706_v59  ;;  %v3161_v49 = vld [vmem:[%s3508_s2 + $0xf8] sm:$0xff]  ;;  %v3167_v50 = vld [vmem:[%s3508_s2 + $0xe0] sm:$0xff] }
 0x3e7   :  { %v1015_v52 = vpop.f32.mrf.mxu0  ;;  %v1086_v61 = vpop.f32.mrf.mxu1  ;;  %v3209_v58 = vld [vmem:[%s3508_s2 + $0xb8] sm:$0xff]  ;;  %v3215_v59 = vld [vmem:[%s3508_s2 + $0xa0] sm:$0xff] }
 0x3e8   :  { %v1852_v54 = vmul.f32 -1.442695, %v1089_v51  ;;  %v1090_v56 = vadd.f32 %v1015_v52, %v3705_v55  ;;  %v1854_v63 = vmul.f32 -1.442695, %v1091_v60  ;;  %v1092_v1 = vadd.f32 %v1086_v61, %v3707_v0  ;;  %v3173_v51 = vld [vmem:[%s3508_s2 + $0xf0] sm:$0xff]  ;;  %v3179_v52 = vld [vmem:[%s3508_s2 + $0xc8] sm:$0xff] }
 0x3e9   :  { %v3191_v55 = vld [vmem:[%s3508_s2 + $0xc0] sm:$0xff]  ;;  %v3221_v60 = vld [vmem:[%s3508_s2 + $0xb0] sm:$0xff]  ;;  %v3227_v61 = vld [vmem:[%s3508_s2 + $0x88] sm:$0xff] }
 0x3ea   :  { %1916 = vpow2.f32 %v1852_v54  ;;  %v1853_v57 = vmul.f32 -1.442695, %v1090_v56  ;;  %v3185_v54 = vld [vmem:[%s3508_s2 + $0xd8] sm:$0xff]  ;;  %v3197_v56 = vld [vmem:[%s3508_s2 + $0xd0] sm:$0xff]  ;;  %v3239_v0 = vld [vmem:[%s3508_s2 + $0x80] sm:$0xff] }
 0x3ec   :  { %1918 = vpow2.f32 %v1853_v57  ;;  %v3203_v57 = vld [vmem:[%s3508_s2 + $0xa8] sm:$0xff] }
 0x3ed   :  { %1920 = vpow2.f32 %v1854_v63  ;;  %v3233_v63 = vld [vmem:[%s3508_s2 + $0x98] sm:$0xff] }
 0x3ee   :  { %1922 = vtanh.f32 %v1092_v1  ;;  %v3245_v1 = vld [vmem:[%s3508_s2 + $0x90] sm:$0xff] }
 0x3ef   :  { %3710 = vst [vmem:[#allocation6_spill] sm:$0xff] %v3245_v1 }
 0x3f7   :  { %v1917_v2 = vpop.eup %1916 }
 0x3f8   :  { %v1102_v35 = vadd.f32 1.0, %v1917_v2  ;;  %v3251_v2 = vld [vmem:[%s3508_s2 + $0x68] sm:$0xff] }
 0x3f9   :  { %v1919_v14 = vpop.eup %1918  ;;  %3711 = vst [vmem:[#allocation27_spill] sm:$0xff] %v3251_v2 }
 0x3fa   :  { %1924 = vrcp.f32 %v1102_v35  ;;  %v1103_v44 = vadd.f32 1.0, %v1919_v14  ;;  %v1921_v20 = vpop.eup %1920  ;;  %v3257_v35 = vld [vmem:[%s3508_s2 + $0x78] sm:$0xff]  ;;  %v3263_v14 = vld [vmem:[%s3508_s2 + $0x60] sm:$0xff] }
 0x3fb   :  { %v1923_v21 = vpop.eup %1922  ;;  %v1104_v25 = vadd.f32 1.0, %v1921_v20  ;;  %3712 = vst [vmem:[#allocation29_spill] sm:$0xff] %v3257_v35  ;;  %3713 = vst [vmem:[#allocation28_spill] sm:$0xff] %v3263_v14  ;;  %v3275_v20 = vld [vmem:[%s3508_s2 + $0x48] sm:$0xff] }
 0x3fc   :  { %1926 = vrcp.f32 %v1103_v44  ;;  %v3269_v44 = vld [vmem:[%s3508_s2 + $0x70] sm:$0xff]  ;;  %3715 = vst [vmem:[#allocation10_spill] sm:$0xff] %v3275_v20 }
 0x3fd   :  { %1928 = vrcp.f32 %v1104_v25  ;;  %3714 = vst [vmem:[#allocation30_spill] sm:$0xff] %v3269_v44  ;;  %v3305_v25 = vld [vmem:[%s3508_s2 + $0x38] sm:$0xff] }
 0x3fe   :  { %3720 = vst [vmem:[#allocation15_spill] sm:$0xff] %v3305_v25 }
 0x407   :  { %v1925_v22 = vpop.eup %1924 }
 0x408   :  { %v1113_v23 = vmul.f32 %v1925_v22, %v1923_v21  ;;  %v3281_v21 = vld [vmem:[%s3508_s2 + $0x58] sm:$0xff]  ;;  %v3287_v22 = vld [vmem:[%s3508_s2 + $0x40] sm:$0xff] }
 0x409   :  { %v1927_v24 = vpop.eup %1926  ;;  %3716 = vst [vmem:[#allocation11_spill] sm:$0xff] %v3281_v21  ;;  %3717 = vst [vmem:[#allocation12_spill] sm:$0xff] %v3287_v22 }
 0x40a   :  { %v1112_v27 = vmul.f32 %v1927_v24, %v2895_v45  ;;  %v1929_v29 = vpop.eup %1928  ;;  %v3155_v45 = vld [vmem:[%s3508_s2 + $0xe8] sm:$0xff] }
 0x40b   :  { %v3299_v24 = vld [vmem:[%s3508_s2 + $0x28] sm:$0xff] }
 0x40c   :  { %v3099_v28 = vadd.f32 %v1113_v23, %v1112_v27  ;;  %v3293_v23 = vld [vmem:[%s3508_s2 + $0x50] sm:$0xff]  ;;  %3719 = vst [vmem:[#allocation14_spill] sm:$0xff] %v3299_v24  ;;  %v3311_v27 = vld [vmem:[%s3508_s2 + $0x20] sm:$0xff] }
 0x40d   :  { %3718 = vst [vmem:[#allocation13_spill] sm:$0xff] %v3293_v23  ;;  %3721 = vst [vmem:[#allocation16_spill] sm:$0xff] %v3311_v27 }
 0x40e   :  { %1930 = vtanh.f32 %v3099_v28 }
 0x41b   :  { %v1931_v30 = vpop.eup %1930 }
 0x41c   :  { %v1116_v31 = vmul.f32 %v1931_v30, %v1929_v29  ;;  %v3317_v29 = vld [vmem:[%s3508_s2 + $0x30] sm:$0xff]  ;;  %v3323_v30 = vld [vmem:[%s3508_s2 + $0x8] sm:$0xff] }
 0x41d   :  { %3722 = vst [vmem:[#allocation17_spill] sm:$0xff] %v3317_v29  ;;  %3723 = vst [vmem:[#allocation18_spill] sm:$0xff] %v3323_v30 }
 0x41e   :  { %1187 = vmatmul.mubr.f32.vlgmr.msra.gmra.mxu0 %v1116_v31  ;;  %1258 = vmatmul.mubr.f32.vlgmr.msra.gmra.mxu1 %v1116_v31  ;;  %v3329_v31 = vld [vmem:[%s3508_s2 + $0x18] sm:$0xff] }
 0x41f   :  { %1298 = vmatpush1.msra.mxu0 %v2901_v7  ;;  %1369 = vmatpush1.msra.mxu1 %v2907_v9  ;;  %3724 = vst [vmem:[#allocation19_spill] sm:$0xff] %v3329_v31 }
 0x420   :  { %1299 = vmatprep.subr.mxu0 %v2913_v62  ;;  %1370 = vmatprep.subr.mxu1 %v2919_v3 }
 0x421   :  { %1300 = vmatpush1.msra.mxu0 %v2925_v12  ;;  %1371 = vmatpush1.msra.mxu1 %v2931_v17 }
 0x422   :  { %1301 = vmatprep.subr.mxu0 %v2937_v11  ;;  %1372 = vmatprep.subr.mxu1 %v2943_v6 }
 0x423   :  { %1302 = vmatpush1.msra.mxu0 %v2949_v10  ;;  %1373 = vmatpush1.msra.mxu1 %v2955_v8 }
 0x424   :  { %1303 = vmatprep.subr.mxu0 %v2961_v4  ;;  %1374 = vmatprep.subr.mxu1 %v2967_v16 }
 0x425   :  { %1304 = vmatpush1.msra.mxu0 %v2973_v13  ;;  %1375 = vmatpush1.msra.mxu1 %v2979_v19 }
 0x426   :  { %1305 = vmatprep.subr.mxu0 %v2985_v53  ;;  %1376 = vmatprep.subr.mxu1 %v2991_v26 }
 0x427   :  { %1306 = vmatpush1.msra.mxu0 %v2997_v15  ;;  %1377 = vmatpush1.msra.mxu1 %v3003_v18 }
 0x428   :  { %1307 = vmatprep.subr.mxu0 %v3009_v5  ;;  %1378 = vmatprep.subr.mxu1 %v3015_v42 }
 0x429   :  { %1308 = vmatpush1.msra.mxu0 %v3708_v32  ;;  %1379 = vmatpush1.msra.mxu1 %v3709_v33 }
 0x42a   :  { %1309 = vmatprep.subr.mxu0 %v3033_v47  ;;  %1380 = vmatprep.subr.mxu1 %v3039_v48 }
 0x42b   :  { %1310 = vmatpush1.msra.mxu0 %v3045_v43  ;;  %1381 = vmatpush1.msra.mxu1 %v3051_v46 }
 0x42c   :  { %1311 = vmatprep.subr.mxu0 %v3131_v34  ;;  %1382 = vmatprep.subr.mxu1 %v3137_v36 }
 0x42d   :  { %1312 = vmatpush1.msra.mxu0 %v3143_v37  ;;  %1383 = vmatpush1.msra.mxu1 %v3149_v39 }
 0x42e   :  { %1313 = vmatprep.subr.mxu0 %v3155_v45  ;;  %1384 = vmatprep.subr.mxu1 %v3161_v49 }
 0x42f   :  { %1314 = vmatpush1.msra.mxu0 %v3167_v50  ;;  %1385 = vmatpush1.msra.mxu1 %v3173_v51 }
 0x430   :  { %1315 = vmatprep.subr.mxu0 %v3179_v52  ;;  %1386 = vmatprep.subr.mxu1 %v3185_v54 }
 0x431   :  { %1316 = vmatpush1.msra.mxu0 %v3191_v55  ;;  %1387 = vmatpush1.msra.mxu1 %v3197_v56 }
 0x432   :  { %1317 = vmatprep.subr.mxu0 %v3203_v57  ;;  %1388 = vmatprep.subr.mxu1 %v3209_v58 }
 0x433   :  { %1318 = vmatpush1.msra.mxu0 %v3215_v59  ;;  %1389 = vmatpush1.msra.mxu1 %v3221_v60 }
 0x434   :  { %1319 = vmatprep.subr.mxu0 %v3227_v61  ;;  %1390 = vmatprep.subr.mxu1 %v3233_v63 }
 0x435   :  { %1320 = vmatpush1.msra.mxu0 %v3239_v0  ;;  %1391 = vmatpush1.msra.mxu1 %v3245_v1 }
 0x436   :  { %1321 = vmatprep.subr.mxu0 %v3251_v2  ;;  %1392 = vmatprep.subr.mxu1 %v3257_v35 }
 0x437   :  { %1322 = vmatpush1.msra.mxu0 %v3263_v14  ;;  %1393 = vmatpush1.msra.mxu1 %v3269_v44  ;;  %v3729_v44 = vld [vmem:[#allocation40_spill] sm:$0xff] }
 0x438   :  { %1323 = vmatprep.subr.mxu0 %v3275_v20  ;;  %1394 = vmatprep.subr.mxu1 %v3281_v21 }
 0x439   :  { %1324 = vmatpush1.msra.mxu0 %v3287_v22  ;;  %1395 = vmatpush1.msra.mxu1 %v3293_v23  ;;  %v3728_v23 = vld [vmem:[#allocation41_spill] sm:$0xff] }
 0x43a   :  { %1325 = vmatprep.subr.mxu0 %v3299_v24  ;;  %1396 = vmatprep.subr.mxu1 %v3305_v25 }
 0x43b   :  { %1326 = vmatpush1.msra.mxu0 %v3311_v27  ;;  %1397 = vmatpush1.msra.mxu1 %v3317_v29  ;;  %v3335_v27 = vld [vmem:[%s3508_s2] sm:$0xff]  ;;  %v3727_v29 = vld [vmem:[#allocation39_spill] sm:$0xff] }
 0x43c   :  { %1327 = vmatprep.subr.mxu0 %v3323_v30  ;;  %1398 = vmatprep.subr.mxu1 %v3329_v31  ;;  %3725 = vst [vmem:[#allocation20_spill] sm:$0xff] %v3335_v27  ;;  %v3342_v30 = vld [vmem:[%s3508_s2 + $0x10] sm:$0xff] }
 0x43d   :  { %1328 = vmatpush1.msra.mxu0 %v3335_v27  ;;  %1361 = vmatprep.mubr.f32.mxu0 %v3694_v38  ;;  %3726 = vst [vmem:[#allocation21_spill] sm:$0xff] %v3342_v30 }
 0x43e   :  { %1399 = vmatpush1.msra.mxu1 %v3342_v30  ;;  %1432 = vmatprep.mubr.f32.mxu1 %v3694_v38  ;;  %v3730_v38 = vld [vmem:[#allocation42_spill] sm:$0xff] }
 0x43f   :  { %1472 = vmatprep.subr.mxu0 %v2881_v40  ;;  %1543 = vmatprep.subr.mxu1 %v2887_v41 }
 0x4de   :  { %v1188_v31 = vpop.f32.mrf.mxu0  ;;  %v1259_v20 = vpop.f32.mrf.mxu1 }
 0x4df   :  { %v1264_v25 = vadd.f32 %v1188_v31, %v3727_v29  ;;  %v1266_v14 = vadd.f32 %v1259_v20, %v3729_v44  ;;  %v3737_v31 = vld [vmem:[#allocation11_spill] sm:$0xff] }
 0x4e0   :  { %v1190_v24 = vpop.f32.mrf.mxu0  ;;  %v1261_v30 = vpop.f32.mrf.mxu1 }
 0x4e1   :  { %v1855_v27 = vmul.f32 -1.442695, %v1264_v25  ;;  %v1265_v22 = vadd.f32 %v1190_v24, %v3728_v23  ;;  %v1857_v35 = vmul.f32 -1.442695, %v1266_v14  ;;  %v1267_v2 = vadd.f32 %v1261_v30, %v3730_v38  ;;  %v3735_v14 = vld [vmem:[#allocation30_spill] sm:$0xff] }
 0x4e2   :  { %v3736_v30 = vld [vmem:[#allocation10_spill] sm:$0xff] }
 0x4e3   :  { %1932 = vpow2.f32 %v1855_v27  ;;  %v1856_v21 = vmul.f32 -1.442695, %v1265_v22 }
 0x4e5   :  { %1934 = vpow2.f32 %v1856_v21 }
 0x4e6   :  { %1936 = vpow2.f32 %v1857_v35 }
 0x4e7   :  { %1938 = vtanh.f32 %v1267_v2  ;;  %v3734_v2 = vld [vmem:[#allocation28_spill] sm:$0xff] }
 0x4f0   :  { %v1933_v40 = vpop.eup %1932 }
 0x4f1   :  { %v1277_v1 = vadd.f32 1.0, %v1933_v40 }
 0x4f2   :  { %v1935_v41 = vpop.eup %1934 }
 0x4f3   :  { %1940 = vrcp.f32 %v1277_v1  ;;  %v1278_v29 = vadd.f32 1.0, %v1935_v41  ;;  %v1937_v25 = vpop.eup %1936  ;;  %v3731_v41 = vld [vmem:[#allocation6_spill] sm:$0xff]  ;;  %v3733_v1 = vld [vmem:[#allocation29_spill] sm:$0xff] }
 0x4f4   :  { %v1939_v23 = vpop.eup %1938  ;;  %v1279_v27 = vadd.f32 1.0, %v1937_v25  ;;  %v3739_v25 = vld [vmem:[#allocation13_spill] sm:$0xff] }
 0x4f5   :  { %1942 = vrcp.f32 %v1278_v29  ;;  %v3738_v29 = vld [vmem:[#allocation12_spill] sm:$0xff] }
 0x4f6   :  { %1944 = vrcp.f32 %v1279_v27  ;;  %v3744_v27 = vld [vmem:[#allocation18_spill] sm:$0xff] }
 0x500   :  { %v1941_v24 = vpop.eup %1940 }
 0x501   :  { %v1288_v22 = vmul.f32 %v1941_v24, %v1939_v23  ;;  %v3740_v23 = vld [vmem:[#allocation14_spill] sm:$0xff]  ;;  %v3741_v24 = vld [vmem:[#allocation15_spill] sm:$0xff] }
 0x502   :  { %v1943_v21 = vpop.eup %1942 }
 0x503   :  { %v1287_v44 = vmul.f32 %v1943_v21, %v3099_v28  ;;  %v1945_v38 = vpop.eup %1944  ;;  %v3732_v28 = vld [vmem:[#allocation27_spill] sm:$0xff]  ;;  %v3743_v21 = vld [vmem:[#allocation17_spill] sm:$0xff] }
 0x505   :  { %v3353_v20 = vadd.f32 %v1288_v22, %v1287_v44  ;;  %v3742_v22 = vld [vmem:[#allocation16_spill] sm:$0xff]  ;;  %v3745_v44 = vld [vmem:[#allocation19_spill] sm:$0xff] }
 0x507   :  { %1946 = vtanh.f32 %v3353_v20 }
 0x514   :  { %v1947_v40 = vpop.eup %1946 }
 0x515   :  { %v1291_v35 = vmul.f32 %v1947_v40, %v1945_v38  ;;  %v3746_v38 = vld [vmem:[#allocation20_spill] sm:$0xff]  ;;  %v3747_v40 = vmov 0.0  }
 0x517   :  { %1362 = vmatmul.mubr.f32.vlgmr.msra.gmra.mxu0 %v1291_v35  ;;  %1433 = vmatmul.mubr.f32.vlgmr.msra.gmra.mxu1 %v1291_v35  ;;  %v3748_v35 = vld [vmem:[#allocation21_spill] sm:$0xff] }
 0x518   :  { %1473 = vmatpush1.msra.mxu0 %v2901_v7  ;;  %1544 = vmatpush1.msra.mxu1 %v2907_v9 }
 0x519   :  { %1474 = vmatprep.subr.mxu0 %v2913_v62  ;;  %1545 = vmatprep.subr.mxu1 %v2919_v3 }
 0x51a   :  { %1475 = vmatpush1.msra.mxu0 %v2925_v12  ;;  %1546 = vmatpush1.msra.mxu1 %v2931_v17 }
 0x51b   :  { %1476 = vmatprep.subr.mxu0 %v2937_v11  ;;  %1547 = vmatprep.subr.mxu1 %v2943_v6 }
 0x51c   :  { %1477 = vmatpush1.msra.mxu0 %v2949_v10  ;;  %1548 = vmatpush1.msra.mxu1 %v2955_v8 }
 0x51d   :  { %1478 = vmatprep.subr.mxu0 %v2961_v4  ;;  %1549 = vmatprep.subr.mxu1 %v2967_v16 }
 0x51e   :  { %1479 = vmatpush1.msra.mxu0 %v2973_v13  ;;  %1550 = vmatpush1.msra.mxu1 %v2979_v19 }
 0x51f   :  { %1480 = vmatprep.subr.mxu0 %v2985_v53  ;;  %1551 = vmatprep.subr.mxu1 %v2991_v26 }
 0x520   :  { %1481 = vmatpush1.msra.mxu0 %v2997_v15  ;;  %1552 = vmatpush1.msra.mxu1 %v3003_v18 }
 0x521   :  { %1482 = vmatprep.subr.mxu0 %v3009_v5  ;;  %1553 = vmatprep.subr.mxu1 %v3015_v42 }
 0x522   :  { %1483 = vmatpush1.msra.mxu0 %v3708_v32  ;;  %1554 = vmatpush1.msra.mxu1 %v3709_v33 }
 0x523   :  { %1484 = vmatprep.subr.mxu0 %v3033_v47  ;;  %1555 = vmatprep.subr.mxu1 %v3039_v48 }
 0x524   :  { %1485 = vmatpush1.msra.mxu0 %v3045_v43  ;;  %1556 = vmatpush1.msra.mxu1 %v3051_v46 }
 0x525   :  { %1486 = vmatprep.subr.mxu0 %v3131_v34  ;;  %1557 = vmatprep.subr.mxu1 %v3137_v36 }
 0x526   :  { %1487 = vmatpush1.msra.mxu0 %v3143_v37  ;;  %1558 = vmatpush1.msra.mxu1 %v3149_v39 }
 0x527   :  { %1488 = vmatprep.subr.mxu0 %v3155_v45  ;;  %1559 = vmatprep.subr.mxu1 %v3161_v49 }
 0x528   :  { %1489 = vmatpush1.msra.mxu0 %v3167_v50  ;;  %1560 = vmatpush1.msra.mxu1 %v3173_v51 }
 0x529   :  { %1490 = vmatprep.subr.mxu0 %v3179_v52  ;;  %1561 = vmatprep.subr.mxu1 %v3185_v54 }
 0x52a   :  { %1491 = vmatpush1.msra.mxu0 %v3191_v55  ;;  %1562 = vmatpush1.msra.mxu1 %v3197_v56 }
 0x52b   :  { %1492 = vmatprep.subr.mxu0 %v3203_v57  ;;  %1563 = vmatprep.subr.mxu1 %v3209_v58 }
 0x52c   :  { %1493 = vmatpush1.msra.mxu0 %v3215_v59  ;;  %1564 = vmatpush1.msra.mxu1 %v3221_v60 }
 0x52d   :  { %1494 = vmatprep.subr.mxu0 %v3227_v61  ;;  %1565 = vmatprep.subr.mxu1 %v3233_v63 }
 0x52e   :  { %1495 = vmatpush1.msra.mxu0 %v3239_v0  ;;  %1566 = vmatpush1.msra.mxu1 %v3731_v41 }
 0x52f   :  { %1496 = vmatprep.subr.mxu0 %v3732_v28  ;;  %1567 = vmatprep.subr.mxu1 %v3733_v1 }
 0x530   :  { %1497 = vmatpush1.msra.mxu0 %v3734_v2  ;;  %1568 = vmatpush1.msra.mxu1 %v3735_v14  ;;  %v3753_v14 = vld [vmem:[#allocation44_spill] sm:$0xff] }
 0x531   :  { %1498 = vmatprep.subr.mxu0 %v3736_v30  ;;  %1569 = vmatprep.subr.mxu1 %v3737_v31 }
 0x532   :  { %1499 = vmatpush1.msra.mxu0 %v3738_v29  ;;  %1570 = vmatpush1.msra.mxu1 %v3739_v25  ;;  %v3749_v25 = vld [vmem:[#allocation7_spill] sm:$0xff] }
 0x533   :  { %1500 = vmatprep.subr.mxu0 %v3740_v23  ;;  %1571 = vmatprep.subr.mxu1 %v3741_v24  ;;  %v3750_v23 = vld [vmem:[#allocation8_spill] sm:$0xff] }
 0x534   :  { %1501 = vmatpush1.msra.mxu0 %v3742_v22  ;;  %1572 = vmatpush1.msra.mxu1 %v3743_v21  ;;  %v3751_v22 = vld [vmem:[#allocation43_spill] sm:$0xff] }
 0x535   :  { %1502 = vmatprep.subr.mxu0 %v3744_v27  ;;  %1573 = vmatprep.subr.mxu1 %v3745_v44  ;;  %v3752_v27 = vld [vmem:[#allocation45_spill] sm:$0xff] }
 0x536   :  { %1503 = vmatpush1.msra.mxu0 %v3746_v38  ;;  %1536 = vmatprep.mubr.f32.mxu0 %v3747_v40 }
 0x537   :  { %1574 = vmatpush1.msra.mxu1 %v3748_v35  ;;  %1607 = vmatprep.mubr.f32.mxu1 %v3747_v40  ;;  %v3754_v40 = vld [vmem:[#allocation46_spill] sm:$0xff] }
 0x538   :  { %1647 = vmatprep.subr.mxu0 %v3749_v25  ;;  %1718 = vmatprep.subr.mxu1 %v3750_v23 }
 0x5d7   :  { %v1363_v24 = vpop.f32.mrf.mxu0  ;;  %v1434_v38 = vpop.f32.mrf.mxu1 }
 0x5d8   :  { %v1439_v29 = vadd.f32 %v1363_v24, %v3751_v22  ;;  %v1441_v2 = vadd.f32 %v1434_v38, %v3753_v14 }
 0x5d9   :  { %v1365_v21 = vpop.f32.mrf.mxu0  ;;  %v1436_v35 = vpop.f32.mrf.mxu1 }
 0x5da   :  { %v1858_v31 = vmul.f32 -1.442695, %v1439_v29  ;;  %v1440_v30 = vadd.f32 %v1365_v21, %v3752_v27  ;;  %v1860_v1 = vmul.f32 -1.442695, %v1441_v2  ;;  %v1442_v28 = vadd.f32 %v1436_v35, %v3754_v40  ;;  %v3777_v35 = vld [vmem:[#allocation51_spill] sm:$0xff] }
 0x5dc   :  { %1948 = vpow2.f32 %v1858_v31  ;;  %v1859_v44 = vmul.f32 -1.442695, %v1440_v30 }
 0x5de   :  { %1950 = vpow2.f32 %v1859_v44 }
 0x5df   :  { %1952 = vpow2.f32 %v1860_v1 }
 0x5e0   :  { %1954 = vtanh.f32 %v1442_v28 }
 0x5e9   :  { %v1949_v25 = vpop.eup %1948 }
 0x5ea   :  { %v1452_v41 = vadd.f32 1.0, %v1949_v25 }
 0x5eb   :  { %v1951_v23 = vpop.eup %1950 }
 0x5ec   :  { %1956 = vrcp.f32 %v1452_v41  ;;  %v1453_v24 = vadd.f32 1.0, %v1951_v23  ;;  %v1953_v29 = vpop.eup %1952 }
 0x5ed   :  { %v1955_v22 = vpop.eup %1954  ;;  %v1454_v27 = vadd.f32 1.0, %v1953_v29  ;;  %v3778_v29 = vld [vmem:[#allocation53_spill] sm:$0xff] }
 0x5ee   :  { %1958 = vrcp.f32 %v1453_v24 }
 0x5ef   :  { %1960 = vrcp.f32 %v1454_v27 }
 0x5f9   :  { %v1957_v31 = vpop.eup %1956 }
 0x5fa   :  { %v1463_v30 = vmul.f32 %v1957_v31, %v1955_v22 }
 0x5fb   :  { %v1959_v21 = vpop.eup %1958 }
 0x5fc   :  { %v1462_v14 = vmul.f32 %v1959_v21, %v3353_v20  ;;  %v1961_v2 = vpop.eup %1960  ;;  %v3779_v21 = vld [vmem:[#allocation52_spill] sm:$0xff] }
 0x5fe   :  { %v3427_v44 = vadd.f32 %v1463_v30, %v1462_v14 }
 0x600   :  { %1962 = vtanh.f32 %v3427_v44 }
 0x60d   :  { %v1963_v1 = vpop.eup %1962 }
 0x60e   :  { %v1466_v38 = vmul.f32 %v1963_v1, %v1961_v2  ;;  %v3780_v2 = vld [vmem:[#allocation54_spill] sm:$0xff] }
 0x610   :  { %1537 = vmatmul.mubr.f32.vlgmr.msra.gmra.mxu0 %v1466_v38  ;;  %1608 = vmatmul.mubr.f32.vlgmr.msra.gmra.mxu1 %v1466_v38 }
 0x611   :  { %1648 = vmatpush1.msra.mxu0 %v2901_v7  ;;  %1719 = vmatpush1.msra.mxu1 %v2907_v9  ;;  %v3755_v7 = vld [vmem:[#allocation6_spill] sm:$0xff]  ;;  %v3756_v9 = vld [vmem:[#allocation27_spill] sm:$0xff] }
 0x612   :  { %1649 = vmatprep.subr.mxu0 %v2913_v62  ;;  %1720 = vmatprep.subr.mxu1 %v2919_v3  ;;  %v3757_v62 = vld [vmem:[#allocation29_spill] sm:$0xff]  ;;  %v3758_v3 = vld [vmem:[#allocation28_spill] sm:$0xff] }
 0x613   :  { %1650 = vmatpush1.msra.mxu0 %v2925_v12  ;;  %1721 = vmatpush1.msra.mxu1 %v2931_v17  ;;  %v3759_v12 = vld [vmem:[#allocation30_spill] sm:$0xff] }
 0x614   :  { %1651 = vmatprep.subr.mxu0 %v2937_v11  ;;  %1722 = vmatprep.subr.mxu1 %v2943_v6  ;;  %v3760_v17 = vld [vmem:[#allocation10_spill] sm:$0xff]  ;;  %v3761_v11 = vld [vmem:[#allocation11_spill] sm:$0xff]  ;;  %v3762_v6 = vld [vmem:[#allocation12_spill] sm:$0xff] }
 0x615   :  { %1652 = vmatpush1.msra.mxu0 %v2949_v10  ;;  %1723 = vmatpush1.msra.mxu1 %v2955_v8  ;;  %v3763_v10 = vld [vmem:[#allocation13_spill] sm:$0xff]  ;;  %v3764_v8 = vld [vmem:[#allocation14_spill] sm:$0xff] }
 0x616   :  { %1653 = vmatprep.subr.mxu0 %v2961_v4  ;;  %1724 = vmatprep.subr.mxu1 %v2967_v16  ;;  %v3765_v4 = vld [vmem:[#allocation15_spill] sm:$0xff]  ;;  %v3766_v16 = vld [vmem:[#allocation16_spill] sm:$0xff] }
 0x617   :  { %1654 = vmatpush1.msra.mxu0 %v2973_v13  ;;  %1725 = vmatpush1.msra.mxu1 %v2979_v19  ;;  %v3767_v13 = vld [vmem:[#allocation17_spill] sm:$0xff]  ;;  %v3768_v19 = vld [vmem:[#allocation18_spill] sm:$0xff] }
 0x618   :  { %1655 = vmatprep.subr.mxu0 %v2985_v53  ;;  %1726 = vmatprep.subr.mxu1 %v2991_v26  ;;  %v3769_v53 = vld [vmem:[#allocation19_spill] sm:$0xff]  ;;  %v3770_v26 = vld [vmem:[#allocation20_spill] sm:$0xff] }
 0x619   :  { %1656 = vmatpush1.msra.mxu0 %v2997_v15  ;;  %1727 = vmatpush1.msra.mxu1 %v3003_v18  ;;  %v3771_v15 = vmov 0.0   ;;  %v3772_v18 = vld [vmem:[#allocation21_spill] sm:$0xff] }
 0x61a   :  { %1657 = vmatprep.subr.mxu0 %v3009_v5  ;;  %1728 = vmatprep.subr.mxu1 %v3015_v42  ;;  %v3773_v42 = vld [vmem:[#allocation47_spill] sm:$0xff] }
 0x61b   :  { %1658 = vmatpush1.msra.mxu0 %v3708_v32  ;;  %1729 = vmatpush1.msra.mxu1 %v3709_v33 }
 0x61c   :  { %1659 = vmatprep.subr.mxu0 %v3033_v47  ;;  %1730 = vmatprep.subr.mxu1 %v3039_v48  ;;  %v3774_v48 = vld [vmem:[#allocation49_spill] sm:$0xff] }
 0x61d   :  { %1660 = vmatpush1.msra.mxu0 %v3045_v43  ;;  %1731 = vmatpush1.msra.mxu1 %v3051_v46 }
 0x61e   :  { %1661 = vmatprep.subr.mxu0 %v3131_v34  ;;  %1732 = vmatprep.subr.mxu1 %v3137_v36  ;;  %v3775_v36 = vld [vmem:[#allocation48_spill] sm:$0xff] }
 0x61f   :  { %1662 = vmatpush1.msra.mxu0 %v3143_v37  ;;  %1733 = vmatpush1.msra.mxu1 %v3149_v39 }
 0x620   :  { %1663 = vmatprep.subr.mxu0 %v3155_v45  ;;  %1734 = vmatprep.subr.mxu1 %v3161_v49  ;;  %v3776_v49 = vld [vmem:[#allocation50_spill] sm:$0xff] }
 0x621   :  { %1664 = vmatpush1.msra.mxu0 %v3167_v50  ;;  %1735 = vmatpush1.msra.mxu1 %v3173_v51 }
 0x622   :  { %1665 = vmatprep.subr.mxu0 %v3179_v52  ;;  %1736 = vmatprep.subr.mxu1 %v3185_v54 }
 0x623   :  { %1666 = vmatpush1.msra.mxu0 %v3191_v55  ;;  %1737 = vmatpush1.msra.mxu1 %v3197_v56 }
 0x624   :  { %1667 = vmatprep.subr.mxu0 %v3203_v57  ;;  %1738 = vmatprep.subr.mxu1 %v3209_v58 }
 0x625   :  { %1668 = vmatpush1.msra.mxu0 %v3215_v59  ;;  %1739 = vmatpush1.msra.mxu1 %v3221_v60 }
 0x626   :  { %1669 = vmatprep.subr.mxu0 %v3227_v61  ;;  %1740 = vmatprep.subr.mxu1 %v3233_v63 }
 0x627   :  { %1670 = vmatpush1.msra.mxu0 %v3239_v0  ;;  %1741 = vmatpush1.msra.mxu1 %v3755_v7 }
 0x628   :  { %1671 = vmatprep.subr.mxu0 %v3756_v9  ;;  %1742 = vmatprep.subr.mxu1 %v3757_v62 }
 0x629   :  { %1672 = vmatpush1.msra.mxu0 %v3758_v3  ;;  %1743 = vmatpush1.msra.mxu1 %v3759_v12 }
 0x62a   :  { %1673 = vmatprep.subr.mxu0 %v3760_v17  ;;  %1744 = vmatprep.subr.mxu1 %v3761_v11 }
 0x62b   :  { %1674 = vmatpush1.msra.mxu0 %v3762_v6  ;;  %1745 = vmatpush1.msra.mxu1 %v3763_v10 }
 0x62c   :  { %1675 = vmatprep.subr.mxu0 %v3764_v8  ;;  %1746 = vmatprep.subr.mxu1 %v3765_v4 }
 0x62d   :  { %1676 = vmatpush1.msra.mxu0 %v3766_v16  ;;  %1747 = vmatpush1.msra.mxu1 %v3767_v13 }
 0x62e   :  { %1677 = vmatprep.subr.mxu0 %v3768_v19  ;;  %1748 = vmatprep.subr.mxu1 %v3769_v53 }
 0x62f   :  { %1678 = vmatpush1.msra.mxu0 %v3770_v26  ;;  %1711 = vmatprep.mubr.f32.mxu0 %v3771_v15 }
 0x630   :  { %1749 = vmatpush1.msra.mxu1 %v3772_v18  ;;  %1782 = vmatprep.mubr.f32.mxu1 %v3771_v15 }
 0x6d0   :  { %v1538_v5 = vpop.f32.mrf.mxu0  ;;  %v1609_v34 = vpop.f32.mrf.mxu1 }
 0x6d1   :  { %v1614_v43 = vadd.f32 %v1538_v5, %v3773_v42  ;;  %v1616_v37 = vadd.f32 %v1609_v34, %v3775_v36 }
 0x6d2   :  { %v1540_v46 = vpop.f32.mrf.mxu0  ;;  %v1611_v39 = vpop.f32.mrf.mxu1 }
 0x6d3   :  { %v1861_v47 = vmul.f32 -1.442695, %v1614_v43  ;;  %v1615_v32 = vadd.f32 %v1540_v46, %v3774_v48  ;;  %v1863_v45 = vmul.f32 -1.442695, %v1616_v37  ;;  %v1617_v50 = vadd.f32 %v1611_v39, %v3776_v49 }
 0x6d5   :  { %1964 = vpow2.f32 %v1861_v47  ;;  %v1862_v33 = vmul.f32 -1.442695, %v1615_v32 }
 0x6d7   :  { %1966 = vpow2.f32 %v1862_v33 }
 0x6d8   :  { %1968 = vpow2.f32 %v1863_v45 }
 0x6d9   :  { %1970 = vtanh.f32 %v1617_v50 }
 0x6e2   :  { %v1965_v51 = vpop.eup %1964 }
 0x6e3   :  { %v1627_v52 = vadd.f32 1.0, %v1965_v51 }
 0x6e4   :  { %v1967_v54 = vpop.eup %1966 }
 0x6e5   :  { %1972 = vrcp.f32 %v1627_v52  ;;  %v1628_v55 = vadd.f32 1.0, %v1967_v54  ;;  %v1969_v56 = vpop.eup %1968 }
 0x6e6   :  { %v1971_v57 = vpop.eup %1970  ;;  %v1629_v61 = vadd.f32 1.0, %v1969_v56 }
 0x6e7   :  { %1974 = vrcp.f32 %v1628_v55 }
 0x6e8   :  { %1976 = vrcp.f32 %v1629_v61 }
 0x6f2   :  { %v1973_v58 = vpop.eup %1972 }
 0x6f3   :  { %v1638_v59 = vmul.f32 %v1973_v58, %v1971_v57 }
 0x6f4   :  { %v1975_v60 = vpop.eup %1974 }
 0x6f5   :  { %v1637_v63 = vmul.f32 %v1975_v60, %v3427_v44  ;;  %v1977_v20 = vpop.eup %1976 }
 0x6f7   :  { %v1639_v0 = vadd.f32 %v1638_v59, %v1637_v63 }
 0x6f9   :  { %1978 = vtanh.f32 %v1639_v0 }
 0x706   :  { %v1979_v41 = vpop.eup %1978 }
 0x707   :  { %v1641_v28 = vmul.f32 %v1979_v41, %v1977_v20 }
 0x709   :  { %1712 = vmatmul.mubr.f32.vlgmr.msra.gmra.mxu0 %v1641_v28  ;;  %1783 = vmatmul.mubr.f32.vlgmr.msra.gmra.mxu1 %v1641_v28 }
 0x7c9   :  { %v1713_v40 = vpop.f32.mrf.mxu0  ;;  %v1784_v30 = vpop.f32.mrf.mxu1 }
 0x7ca   :  { %v1789_v25 = vadd.f32 %v1713_v40, %v3777_v35  ;;  %v1791_v27 = vadd.f32 %v1784_v30, %v3779_v21 }
 0x7cb   :  { %v1715_v23 = vpop.f32.mrf.mxu0  ;;  %v1786_v14 = vpop.f32.mrf.mxu1 }
 0x7cc   :  { %v1864_v24 = vmul.f32 -1.442695, %v1789_v25  ;;  %v1790_v22 = vadd.f32 %v1715_v23, %v3778_v29  ;;  %v1866_v44 = vmul.f32 -1.442695, %v1791_v27  ;;  %v1792_v1 = vadd.f32 %v1786_v14, %v3780_v2 }
 0x7ce   :  { %1980 = vpow2.f32 %v1864_v24  ;;  %v1865_v31 = vmul.f32 -1.442695, %v1790_v22 }
 0x7d0   :  { %1982 = vpow2.f32 %v1865_v31 }
 0x7d1   :  { %1984 = vpow2.f32 %v1866_v44 }
 0x7d2   :  { %1986 = vtanh.f32 %v1792_v1 }
 0x7db   :  { %v1981_v38 = vpop.eup %1980 }
 0x7dc   :  { %v1802_v7 = vadd.f32 1.0, %v1981_v38 }
 0x7dd   :  { %v1983_v9 = vpop.eup %1982 }
 0x7de   :  { %1988 = vrcp.f32 %v1802_v7  ;;  %v1803_v62 = vadd.f32 1.0, %v1983_v9  ;;  %v1985_v3 = vpop.eup %1984 }
 0x7df   :  { %v1987_v12 = vpop.eup %1986  ;;  %v1804_v10 = vadd.f32 1.0, %v1985_v3 }
 0x7e0   :  { %1990 = vrcp.f32 %v1803_v62 }
 0x7e1   :  { %1992 = vrcp.f32 %v1804_v10 }
 0x7eb   :  { %v1989_v17 = vpop.eup %1988 }
 0x7ec   :  { %v1813_v11 = vmul.f32 %v1989_v17, %v1987_v12 }
 0x7ed   :  { %v1991_v6 = vpop.eup %1990 }
 0x7ee   :  { %v1812_v8 = vmul.f32 %v1991_v6, %v1639_v0  ;;  %v1993_v16 = vpop.eup %1992 }
 0x7f0   :  { %v1814_v4 = vadd.f32 %v1813_v11, %v1812_v8 }
 0x7f2   :  { %1994 = vtanh.f32 %v1814_v4 }
 0x7ff   :  { %v1995_v13 = vpop.eup %1994 }
 0x800   :  { %v1816_v19 = vmul.f32 %v1995_v13, %v1993_v16 }
 0x802   :  { %1822 = vst [vmem:[%s3510_s4] sm:$0xff] %v1816_v19 }

</bundles_post_ra>
